<compile_context>
chip_gen: v5e
topology: v5e:2x2
jax: 0.10.0
libtpu: 0.0.40
codegen_flags: <defaults>
</compile_context>

<pallas_src>
import math

import jax
import jax.numpy as jnp
import numpy as np
from jax.experimental import pallas as pl
from jax.experimental.pallas import tpu as pltpu

EPS = 1e-5
NUM_GROUPS = 16  # nn.GroupNorm(16, channels)


def _round_up8(n):
    return -(-n // 8) * 8


# --------------------------------------------------------------------------- #
# Pallas kernel: all pyramid levels fused into one launch (levels unrolled)
# --------------------------------------------------------------------------- #
def _dense_transformer_level(x_ref, wconv_ref, vec_ref, red_ref, sel_ref,
                             selt_ref, wfc_ref, bfc_ref, out_ref, *,
                             batch, width_pad):
    """1x1 conv -> GroupNorm -> ReLU -> fc for one pyramid level.

      x_ref:     (B*Wp, r_in)  bf16 perspective features, rows = (batch, width)
      wconv_ref: (r_in, R)     bf16 kron(wconv, I_Hin)^T
      vec_ref:   (3, R)        f32 rows = [conv bias, GN gamma, GN beta]
      red_ref:   (B, B*Wp)     f32 masked per-batch reducer (1/count on valid rows)
      sel_ref:   (R, G)        f32 column -> group selector
      selt_ref:  (G, R)        f32 group -> column broadcaster
      wfc_ref:   (R, M)        bf16 fc weight^T (output channels on lanes)
      bfc_ref:   (1, M)        f32 fc bias
      out_ref:   (B*Wp, M)     f32 output
    """
    vec = vec_ref[...]
    bconv = vec[0:1, :]
    gamma = vec[1:2, :]
    beta = vec[2:3, :]
    r_cols = vec.shape[1]

    # 1x1 conv over input channels: bf16 operands on the MXU, f32 accumulation.
    y = jnp.dot(x_ref[...], wconv_ref[...],
                preferred_element_type=jnp.float32) + bconv          # (BW, R) f32

    # GroupNorm statistics (f32): masked per-batch mean of y and y*y via one
    # small matmul each (padded width rows carry zero weight), then a
    # per-group selection matmul.  E[y^2]-mean^2 is clamped at zero.
    red = red_ref[...]
    sel = sel_ref[...]
    stats1 = jnp.dot(red, y, preferred_element_type=jnp.float32)     # (B, R)
    stats2 = jnp.dot(red, y * y, preferred_element_type=jnp.float32) # (B, R)
    mean_g = jnp.dot(stats1, sel, preferred_element_type=jnp.float32)  # (B, G)
    msq_g = jnp.dot(stats2, sel, preferred_element_type=jnp.float32)   # (B, G)
    var_g = jnp.maximum(msq_g - mean_g * mean_g, 0.0)
    inv_g = jax.lax.rsqrt(var_g + EPS)                               # (B, G)

    # Broadcast group stats back to columns, fold in the affine: y*s + t.
    sel_t = selt_ref[...]
    mean_c = jnp.dot(mean_g, sel_t, preferred_element_type=jnp.float32)  # (B, R)
    inv_c = jnp.dot(inv_g, sel_t, preferred_element_type=jnp.float32)    # (B, R)
    s = gamma * inv_c
    t = beta - mean_c * s

    # Apply affine + ReLU with a (B, Wp, R) broadcast (no bcast matmul, no
    # lane-boundary concats/slices).  Padded width rows produce wasted values
    # that are sliced off by the wrapper.
    y3 = y.reshape(batch, width_pad, r_cols)
    y3 = jnp.maximum(y3 * s[:, None, :] + t[:, None, :], 0.0)

    # fc: Conv1d(C*Hin -> C*out_depth, kernel=1); bf16 operands, f32 accumulate.
    yb = y3.reshape(batch * width_pad, r_cols).astype(jnp.bfloat16)
    out_ref[...] = jnp.dot(yb, wfc_ref[...],
                           preferred_element_type=jnp.float32) + bfc_ref[...]


_N_INPUTS_PER_LEVEL = 8


def _make_pyramid_kernel(metas, batch):
    n_levels = len(metas)

    def kernel(*refs):
        in_refs = refs[:n_levels * _N_INPUTS_PER_LEVEL]
        out_refs = refs[n_levels * _N_INPUTS_PER_LEVEL:]
        for l, meta in enumerate(metas):
            lvl = in_refs[l * _N_INPUTS_PER_LEVEL:(l + 1) * _N_INPUTS_PER_LEVEL]
            _dense_transformer_level(*lvl, out_refs[l],
                                     batch=batch,
                                     width_pad=meta["width_pad"])

    return kernel


def prepare_pyramid_kernel_params(params, channels):
    """Per-level DenseTransformer weights in the layouts the kernel expects."""
    G = NUM_GROUPS
    grp_ch = channels // G
    levels = []
    for p in params:
        Hin = p["in_height"]
        R = channels * Hin
        eye_h = jnp.eye(Hin, dtype=jnp.float32)
        wconv_t = jnp.kron(p["wconv"], eye_h).T.astype(jnp.bfloat16)   # (Cin*Hin, R)
        vec = jnp.stack([jnp.repeat(p["bconv"], Hin),
                         jnp.repeat(p["gamma"], Hin),
                         jnp.repeat(p["beta"], Hin)],
                        axis=0).astype(jnp.float32)                     # (3, R)
        gidx = (jnp.arange(R) // Hin) // grp_ch
        sel = (gidx[:, None] == jnp.arange(G)[None, :]).astype(jnp.float32)  # (R, G)
        levels.append(dict(
            r_cols=R,
            m_cols=channels * p["out_depth"],
            grp_elems=grp_ch * Hin,
            wconv_t=wconv_t,
            vec=vec,
            sel=sel,
            sel_t=jnp.transpose(sel),
            wfc_t=p["wfc"].T.astype(jnp.bfloat16),                      # (R, M)
            bfc=p["bfc"][None, :].astype(jnp.float32)))                 # (1, M)
    return levels


def _full_block_spec(shape):
    nd = len(shape)
    return pl.BlockSpec(shape, lambda i, _nd=nd: (0,) * _nd)


def pyramid_dense_pallas(crops, params, kparams, channels):
    """Run the fused all-level kernel.  Returns a list of (B, C, out_depth, W)."""
    B = crops[0].shape[0]

    inputs, in_specs, out_shapes, out_specs, metas = [], [], [], [], []
    flops = 0
    transcendentals = 0
    bytes_accessed = 0
    for crop, p, kp in zip(crops, params, kparams):
        Cin, Hin, W = crop.shape[1], crop.shape[2], crop.shape[3]
        Wp = _round_up8(W)               # per-level sublane-aligned width
        BW = B * Wp
        R, M = kp["r_cols"], kp["m_cols"]

        # (B, Cin, Hin, W) -> rows = (batch, width), cols = Cin*Hin (kron order)
        xt = jnp.transpose(crop, (0, 3, 1, 2)).reshape(B, W, Cin * Hin)
        xt = jnp.pad(xt, ((0, 0), (0, Wp - W), (0, 0)))
        x = xt.reshape(BW, Cin * Hin).astype(jnp.bfloat16)

        count = float(W * kp["grp_elems"])
        valid = (jnp.arange(Wp) < W).astype(jnp.float32) / count
        red = jnp.kron(jnp.eye(B, dtype=jnp.float32), valid[None, :])   # (B, BW)

        lvl = [x, kp["wconv_t"], kp["vec"], red, kp["sel"], kp["sel_t"],
               kp["wfc_t"], kp["bfc"]]
        inputs.extend(lvl)
        in_specs.extend(_full_block_spec(tuple(a.shape)) for a in lvl)
        out_shapes.append(jax.ShapeDtypeStruct((BW, M), jnp.float32))
        out_specs.append(_full_block_spec((BW, M)))
        metas.append(dict(width_pad=Wp))

        flops += 2 * BW * (Cin * Hin) * R + 2 * BW * R * M + 4 * B * BW * R
        transcendentals += B * NUM_GROUPS
        bytes_accessed += sum(int(np.prod(a.shape)) * a.dtype.itemsize for a in lvl)
        bytes_accessed += BW * M * 4

    kernel = _make_pyramid_kernel(metas, B)
    outs = pl.pallas_call(
        kernel,
        out_shape=tuple(out_shapes),
        grid=(1,),
        in_specs=in_specs,
        out_specs=tuple(out_specs),
        compiler_params=pltpu.CompilerParams(
            dimension_semantics=("arbitrary",)),
        cost_estimate=pl.CostEstimate(flops=int(flops),
                                      transcendentals=int(transcendentals),
                                      bytes_accessed=int(bytes_accessed)),
    )(*inputs)

    results = []
    for o, crop, p in zip(outs, crops, params):
        W = crop.shape[3]
        Wp = _round_up8(W)
        D = p["out_depth"]
        o = o.reshape(B, Wp, channels, D)[:, :W]                 # (B, W, C, D)
        results.append(jnp.transpose(o, (0, 2, 3, 1)))           # (B, C, D, W)
    return results


# --------------------------------------------------------------------------- #
# Plain-JAX glue (crop, resampler/grid_sample) + reference core
# --------------------------------------------------------------------------- #
def crop_feature_map(fmap, calib_ds, in_height, zmin, ymid):
    """Per-sample vertical crop (zero padded) -- matches _crop_feature_map."""
    # TODO(synk): per-sample data-dependent crop stays in plain JAX (dynamic_slice).
    B, Cin, H, W = fmap.shape
    fy = calib_ds[:, 1, 1]
    cy = calib_ds[:, 1, 2]
    vmid = ymid * fy / zmin + cy
    vmin = jnp.floor(vmid - in_height / 2).astype(jnp.int32)
    pad = in_height + 1
    fpad = jnp.pad(fmap, ((0, 0), (0, 0), (pad, pad), (0, 0)))

    def one(f, v):
        return jax.lax.dynamic_slice(f, (0, v + pad, 0), (Cin, in_height, W))

    return jax.vmap(one)(fpad, vmin)


def grid_sample_bilinear(feat, grid):
    """F.grid_sample(mode='bilinear', padding_mode='zeros', align_corners=False)."""
    # TODO(synk): bilinear grid_sample is a data-dependent gather; kept in JAX glue.
    B, C, H, W = feat.shape
    x = (grid[..., 0] + 1.0) * W * 0.5 - 0.5
    y = (grid[..., 1] + 1.0) * H * 0.5 - 0.5
    x0 = jnp.floor(x)
    y0 = jnp.floor(y)
    wx1 = x - x0
    wy1 = y - y0
    wx0 = 1.0 - wx1
    wy0 = 1.0 - wy1

    def gather(ix, iy):
        valid = (ix >= 0) & (ix <= W - 1) & (iy >= 0) & (iy <= H - 1)
        ixc = jnp.clip(ix, 0, W - 1).astype(jnp.int32)
        iyc = jnp.clip(iy, 0, H - 1).astype(jnp.int32)

        def one(f, yy, xx):
            return f[:, yy, xx]                                  # (C, Ho, Wo)

        g = jax.vmap(one)(feat, iyc, ixc)                        # (B, C, Ho, Wo)
        return g * valid[:, None, :, :].astype(feat.dtype)

    return (gather(x0, y0) * (wx0 * wy0)[:, None]
            + gather(x0 + 1.0, y0) * (wx1 * wy0)[:, None]
            + gather(x0, y0 + 1.0) * (wx0 * wy1)[:, None]
            + gather(x0 + 1.0, y0 + 1.0) * (wx1 * wy1)[:, None])


def resample(bev, calib_ds, resolution, extents):
    """Resampler.forward: perspective UZ features -> orthographic BEV grid."""
    x1, z1, x2, z2 = extents
    xs = jnp.arange(x1, x2, resolution, dtype=jnp.float32)
    zs = jnp.arange(z1, z2, resolution, dtype=jnp.float32)
    zz, xx = jnp.meshgrid(zs, xs, indexing="ij")
    grid = jnp.stack([xx, zz], axis=-1)                          # (D, Wg, 2)
    sub = calib_ds[:, ::2, ::2]                                  # rows/cols [0,2]
    cam = jnp.einsum("bij,dwj->bdwi", sub, grid)                 # (B, D, Wg, 2)
    u = cam[..., 0] / cam[..., 1]
    u = u / bev.shape[-1] * 2.0 - 1.0
    z = (cam[..., 1] - z1) / (z2 - z1) * 2.0 - 1.0
    gc = jnp.clip(jnp.stack([u, z], axis=-1), -1.1, 1.1)
    return grid_sample_bilinear(bev, gc)


def dense_transformer_core_ref(x, p, channels):
    """Pure-JAX reference of the fused level (bf16 MXU operands, f32 GN stats)."""
    B, Cin, Hin, W = x.shape
    y = jnp.einsum("co,bohw->bchw", p["wconv"].astype(jnp.bfloat16),
                   x.astype(jnp.bfloat16), preferred_element_type=jnp.float32)
    y = y + p["bconv"][None, :, None, None]
    g = y.reshape(B, NUM_GROUPS, (channels // NUM_GROUPS) * Hin * W)
    mean = g.mean(-1, keepdims=True)
    var = g.var(-1, keepdims=True)
    g = (g - mean) / jnp.sqrt(var + EPS)
    y = g.reshape(B, channels, Hin, W)
    y = y * p["gamma"][None, :, None, None] + p["beta"][None, :, None, None]
    y = jnp.maximum(y, 0.0)
    flat = y.reshape(B, channels * Hin, W)
    out = jnp.einsum("mk,bkw->bmw", p["wfc"].astype(jnp.bfloat16),
                     flat.astype(jnp.bfloat16),
                     preferred_element_type=jnp.float32)
    return out + p["bfc"][None, :, None]


# --------------------------------------------------------------------------- #
# Pyramid construction (deterministic parameters) and forward
# --------------------------------------------------------------------------- #
def make_pyramid_params(key, in_channels, channels, resolution, extents,
                        ymin, ymax, focal_length):
    params = []
    for i in range(5):
        focal = focal_length / (2 ** (i + 3))
        zmax = min(math.floor(focal * 2) * resolution, extents[3])
        zmin = math.floor(focal) * resolution if i < 4 else extents[1]
        subset = [extents[0], zmin, extents[2], zmax]
        in_height = math.ceil(focal * (ymax - ymin) / zmin)
        out_depth = math.ceil((zmax - zmin) / resolution)
        ymid = (ymin + ymax) / 2

        k = jax.random.fold_in(key, i)
        k1, k2, k3, k4, k5, k6 = jax.random.split(k, 6)
        wconv = jax.random.normal(k1, (channels, in_channels), jnp.float32) / math.sqrt(in_channels)
        bconv = 0.1 * jax.random.normal(k2, (channels,), jnp.float32)
        gamma = 1.0 + 0.1 * jax.random.normal(k3, (channels,), jnp.float32)
        beta = 0.1 * jax.random.normal(k4, (channels,), jnp.float32)
        wfc = jax.random.normal(k5, (channels * out_depth, channels * in_height),
                                jnp.float32) / math.sqrt(channels * in_height)
        bfc = 0.1 * jax.random.normal(k6, (channels * out_depth,), jnp.float32)

        params.append(dict(
            focal=focal, zmin=zmin, zmax=zmax, subset=subset, ymid=ymid,
            in_height=in_height, out_depth=out_depth,
            wconv=wconv, bconv=bconv, gamma=gamma, beta=beta, wfc=wfc, bfc=bfc))
    return params


def transformer_pyramid_forward(feature_maps, calib, params, resolution,
                                channels, use_pallas=True, kernel_params=None):
    crops, calibs = [], []
    for i, fmap in enumerate(feature_maps):
        p = params[i]
        scale = 8 * 2 ** i
        calib_ds = calib.at[:, :2].set(calib[:, :2] / scale)
        calibs.append(calib_ds)
        crops.append(crop_feature_map(fmap, calib_ds, p["in_height"],
                                      p["zmin"], p["ymid"]))

    if use_pallas:
        if kernel_params is None:
            kernel_params = prepare_pyramid_kernel_params(params, channels)
        bevs = pyramid_dense_pallas(crops, params, kernel_params, channels)
    else:
        bevs = []
        for i, p in enumerate(params):
            B = crops[i].shape[0]
            W = crops[i].shape[3]
            out = dense_transformer_core_ref(crops[i], p, channels)
            bevs.append(out.reshape(B, channels, p["out_depth"], W))

    bev_feats = [resample(bevs[i], calibs[i], resolution, params[i]["subset"])
                 for i in range(len(params))]
    return jnp.concatenate(bev_feats[::-1], axis=-2)


# --------------------------------------------------------------------------- #
if __name__ == "__main__":
    B = 2
    in_channels = 16
    channels = 16
    resolution = 1.0
    extents = [-4.0, 1.0, 4.0, 32.0]
    ymin, ymax = -1.0, 1.0
    focal_length = 128.0          # image assumed 256x256 -> 5 FPN levels

    key = jax.random.PRNGKey(0)
    pkey, fkey = jax.random.split(key)
    params = make_pyramid_params(pkey, in_channels, channels, resolution,
                                 extents, ymin, ymax, focal_length)
    kernel_params = prepare_pyramid_kernel_params(params, channels)

    feature_maps = []
    for i in range(5):
        scale = 8 * 2 ** i
        hw = 256 // scale
        fkey, sub = jax.random.split(fkey)
        feature_maps.append(jax.random.normal(sub, (B, in_channels, hw, hw),
                                              jnp.float32))

    calib = jnp.stack([
        jnp.array([[128.0, 0.0, 128.0], [0.0, 128.0, 128.0], [0.0, 0.0, 1.0]],
                  jnp.float32),
        jnp.array([[128.0, 0.0, 136.0], [0.0, 128.0, 132.0], [0.0, 0.0, 1.0]],
                  jnp.float32),
    ])

    out = transformer_pyramid_forward(feature_maps, calib, params, resolution,
                                      channels, use_pallas=True,
                                      kernel_params=kernel_params)
    out = jax.block_until_ready(out)

    ref = transformer_pyramid_forward(feature_maps, calib, params, resolution,
                                      channels, use_pallas=False)
    ref = jax.block_until_ready(ref)

    assert out.shape == (B, channels, 31, 8), out.shape
    assert bool(jnp.all(jnp.isfinite(out)))
    max_err = float(jnp.max(jnp.abs(out - ref)))
    assert np.allclose(np.asarray(out), np.asarray(ref), rtol=5e-3, atol=5e-3), max_err
    print("KERNEL_OK")
</pallas_src>

<mosaic_0001>
module attributes {stable_mosaic.version = 11 : i64} {
  func.func @kernel(%arg0: i32, %arg1: memref<64x32xbf16, #tpu.memory_space<vmem>>, %arg2: memref<32x32xbf16, #tpu.memory_space<vmem>>, %arg3: memref<3x32xf32, #tpu.memory_space<vmem>>, %arg4: memref<2x64xf32, #tpu.memory_space<vmem>>, %arg5: memref<32x16xf32, #tpu.memory_space<vmem>>, %arg6: memref<16x32xf32, #tpu.memory_space<vmem>>, %arg7: memref<32x256xbf16, #tpu.memory_space<vmem>>, %arg8: memref<1x256xf32, #tpu.memory_space<vmem>>, %arg9: memref<32x32xbf16, #tpu.memory_space<vmem>>, %arg10: memref<32x32xbf16, #tpu.memory_space<vmem>>, %arg11: memref<3x32xf32, #tpu.memory_space<vmem>>, %arg12: memref<2x32xf32, #tpu.memory_space<vmem>>, %arg13: memref<32x16xf32, #tpu.memory_space<vmem>>, %arg14: memref<16x32xf32, #tpu.memory_space<vmem>>, %arg15: memref<32x128xbf16, #tpu.memory_space<vmem>>, %arg16: memref<1x128xf32, #tpu.memory_space<vmem>>, %arg17: memref<16x32xbf16, #tpu.memory_space<vmem>>, %arg18: memref<32x32xbf16, #tpu.memory_space<vmem>>, %arg19: memref<3x32xf32, #tpu.memory_space<vmem>>, %arg20: memref<2x16xf32, #tpu.memory_space<vmem>>, %arg21: memref<32x16xf32, #tpu.memory_space<vmem>>, %arg22: memref<16x32xf32, #tpu.memory_space<vmem>>, %arg23: memref<32x64xbf16, #tpu.memory_space<vmem>>, %arg24: memref<1x64xf32, #tpu.memory_space<vmem>>, %arg25: memref<16x32xbf16, #tpu.memory_space<vmem>>, %arg26: memref<32x32xbf16, #tpu.memory_space<vmem>>, %arg27: memref<3x32xf32, #tpu.memory_space<vmem>>, %arg28: memref<2x16xf32, #tpu.memory_space<vmem>>, %arg29: memref<32x16xf32, #tpu.memory_space<vmem>>, %arg30: memref<16x32xf32, #tpu.memory_space<vmem>>, %arg31: memref<32x32xbf16, #tpu.memory_space<vmem>>, %arg32: memref<1x32xf32, #tpu.memory_space<vmem>>, %arg33: memref<16x32xbf16, #tpu.memory_space<vmem>>, %arg34: memref<32x32xbf16, #tpu.memory_space<vmem>>, %arg35: memref<3x32xf32, #tpu.memory_space<vmem>>, %arg36: memref<2x16xf32, #tpu.memory_space<vmem>>, %arg37: memref<32x16xf32, #tpu.memory_space<vmem>>, %arg38: memref<16x32xf32, #tpu.memory_space<vmem>>, %arg39: memref<32x16xbf16, #tpu.memory_space<vmem>>, %arg40: memref<1x16xf32, #tpu.memory_space<vmem>>, %arg41: memref<64x256xf32, #tpu.memory_space<vmem>>, %arg42: memref<32x128xf32, #tpu.memory_space<vmem>>, %arg43: memref<16x64xf32, #tpu.memory_space<vmem>>, %arg44: memref<16x32xf32, #tpu.memory_space<vmem>>, %arg45: memref<16x16xf32, #tpu.memory_space<vmem>>) attributes {dimension_semantics = [#tpu.dimension_semantics<arbitrary>], iteration_bounds = array<i64: 1>, scalar_prefetch = 0 : i64, scratch_operands = 0 : i64, tpu.core_type = #tpu.core_type<tc>, window_params = [{pipeline_mode = #tpu.pipeline_mode<synchronous>, transform_indices = @transform_0, window_bounds = array<i64: 64, 32>}, {pipeline_mode = #tpu.pipeline_mode<synchronous>, transform_indices = @transform_1, window_bounds = array<i64: 32, 32>}, {pipeline_mode = #tpu.pipeline_mode<synchronous>, transform_indices = @transform_2, window_bounds = array<i64: 3, 32>}, {pipeline_mode = #tpu.pipeline_mode<synchronous>, transform_indices = @transform_3, window_bounds = array<i64: 2, 64>}, {pipeline_mode = #tpu.pipeline_mode<synchronous>, transform_indices = @transform_4, window_bounds = array<i64: 32, 16>}, {pipeline_mode = #tpu.pipeline_mode<synchronous>, transform_indices = @transform_5, window_bounds = array<i64: 16, 32>}, {pipeline_mode = #tpu.pipeline_mode<synchronous>, transform_indices = @transform_6, window_bounds = array<i64: 32, 256>}, {pipeline_mode = #tpu.pipeline_mode<synchronous>, transform_indices = @transform_7, window_bounds = array<i64: 1, 256>}, {pipeline_mode = #tpu.pipeline_mode<synchronous>, transform_indices = @transform_8, window_bounds = array<i64: 32, 32>}, {pipeline_mode = #tpu.pipeline_mode<synchronous>, transform_indices = @transform_9, window_bounds = array<i64: 32, 32>}, {pipeline_mode = #tpu.pipeline_mode<synchronous>, transform_indices = @transform_10, window_bounds = array<i64: 3, 32>}, {pipeline_mode = #tpu.pipeline_mode<synchronous>, transform_indices = @transform_11, window_bounds = array<i64: 2, 32>}, {pipeline_mode = #tpu.pipeline_mode<synchronous>, transform_indices = @transform_12, window_bounds = array<i64: 32, 16>}, {pipeline_mode = #tpu.pipeline_mode<synchronous>, transform_indices = @transform_13, window_bounds = array<i64: 16, 32>}, {pipeline_mode = #tpu.pipeline_mode<synchronous>, transform_indices = @transform_14, window_bounds = array<i64: 32, 128>}, {pipeline_mode = #tpu.pipeline_mode<synchronous>, transform_indices = @transform_15, window_bounds = array<i64: 1, 128>}, {pipeline_mode = #tpu.pipeline_mode<synchronous>, transform_indices = @transform_16, window_bounds = array<i64: 16, 32>}, {pipeline_mode = #tpu.pipeline_mode<synchronous>, transform_indices = @transform_17, window_bounds = array<i64: 32, 32>}, {pipeline_mode = #tpu.pipeline_mode<synchronous>, transform_indices = @transform_18, window_bounds = array<i64: 3, 32>}, {pipeline_mode = #tpu.pipeline_mode<synchronous>, transform_indices = @transform_19, window_bounds = array<i64: 2, 16>}, {pipeline_mode = #tpu.pipeline_mode<synchronous>, transform_indices = @transform_20, window_bounds = array<i64: 32, 16>}, {pipeline_mode = #tpu.pipeline_mode<synchronous>, transform_indices = @transform_21, window_bounds = array<i64: 16, 32>}, {pipeline_mode = #tpu.pipeline_mode<synchronous>, transform_indices = @transform_22, window_bounds = array<i64: 32, 64>}, {pipeline_mode = #tpu.pipeline_mode<synchronous>, transform_indices = @transform_23, window_bounds = array<i64: 1, 64>}, {pipeline_mode = #tpu.pipeline_mode<synchronous>, transform_indices = @transform_24, window_bounds = array<i64: 16, 32>}, {pipeline_mode = #tpu.pipeline_mode<synchronous>, transform_indices = @transform_25, window_bounds = array<i64: 32, 32>}, {pipeline_mode = #tpu.pipeline_mode<synchronous>, transform_indices = @transform_26, window_bounds = array<i64: 3, 32>}, {pipeline_mode = #tpu.pipeline_mode<synchronous>, transform_indices = @transform_27, window_bounds = array<i64: 2, 16>}, {pipeline_mode = #tpu.pipeline_mode<synchronous>, transform_indices = @transform_28, window_bounds = array<i64: 32, 16>}, {pipeline_mode = #tpu.pipeline_mode<synchronous>, transform_indices = @transform_29, window_bounds = array<i64: 16, 32>}, {pipeline_mode = #tpu.pipeline_mode<synchronous>, transform_indices = @transform_30, window_bounds = array<i64: 32, 32>}, {pipeline_mode = #tpu.pipeline_mode<synchronous>, transform_indices = @transform_31, window_bounds = array<i64: 1, 32>}, {pipeline_mode = #tpu.pipeline_mode<synchronous>, transform_indices = @transform_32, window_bounds = array<i64: 16, 32>}, {pipeline_mode = #tpu.pipeline_mode<synchronous>, transform_indices = @transform_33, window_bounds = array<i64: 32, 32>}, {pipeline_mode = #tpu.pipeline_mode<synchronous>, transform_indices = @transform_34, window_bounds = array<i64: 3, 32>}, {pipeline_mode = #tpu.pipeline_mode<synchronous>, transform_indices = @transform_35, window_bounds = array<i64: 2, 16>}, {pipeline_mode = #tpu.pipeline_mode<synchronous>, transform_indices = @transform_36, window_bounds = array<i64: 32, 16>}, {pipeline_mode = #tpu.pipeline_mode<synchronous>, transform_indices = @transform_37, window_bounds = array<i64: 16, 32>}, {pipeline_mode = #tpu.pipeline_mode<synchronous>, transform_indices = @transform_38, window_bounds = array<i64: 32, 16>}, {pipeline_mode = #tpu.pipeline_mode<synchronous>, transform_indices = @transform_39, window_bounds = array<i64: 1, 16>}, {pipeline_mode = #tpu.pipeline_mode<synchronous>, transform_indices = @transform_40, window_bounds = array<i64: 64, 256>}, {pipeline_mode = #tpu.pipeline_mode<synchronous>, transform_indices = @transform_41, window_bounds = array<i64: 32, 128>}, {pipeline_mode = #tpu.pipeline_mode<synchronous>, transform_indices = @transform_42, window_bounds = array<i64: 16, 64>}, {pipeline_mode = #tpu.pipeline_mode<synchronous>, transform_indices = @transform_43, window_bounds = array<i64: 16, 32>}, {pipeline_mode = #tpu.pipeline_mode<synchronous>, transform_indices = @transform_44, window_bounds = array<i64: 16, 16>}]} {
    %c0 = arith.constant 0 : index
    %c0_0 = arith.constant 0 : index
    %0 = vector.load %arg3[%c0, %c0_0] : memref<3x32xf32, #tpu.memory_space<vmem>>, vector<3x32xf32>
    %1 = vector.extract_strided_slice %0 {offsets = [0, 0], sizes = [1, 32], strides = [1, 1]} : vector<3x32xf32> to vector<1x32xf32>
    %2 = vector.extract_strided_slice %0 {offsets = [1, 0], sizes = [1, 32], strides = [1, 1]} : vector<3x32xf32> to vector<1x32xf32>
    %3 = vector.extract_strided_slice %0 {offsets = [2, 0], sizes = [1, 32], strides = [1, 1]} : vector<3x32xf32> to vector<1x32xf32>
    %c0_1 = arith.constant 0 : index
    %c0_2 = arith.constant 0 : index
    %4 = vector.load %arg1[%c0_1, %c0_2] : memref<64x32xbf16, #tpu.memory_space<vmem>>, vector<64x32xbf16>
    %c0_3 = arith.constant 0 : index
    %c0_4 = arith.constant 0 : index
    %5 = vector.load %arg2[%c0_3, %c0_4] : memref<32x32xbf16, #tpu.memory_space<vmem>>, vector<32x32xbf16>
    %cst = arith.constant dense<0.000000e+00> : vector<64x32xf32>
    %6 = tpu.matmul %4, %5, %cst {dimension_numbers = #tpu.dot_dimension_numbers<[1], [0], [0], [1], [0, 0, 1, 1], [], []>} : vector<64x32xbf16>, vector<32x32xbf16>, vector<64x32xf32> -> vector<64x32xf32>
    %7 = vector.broadcast %1 : vector<1x32xf32> to vector<64x32xf32>
    %8 = arith.addf %6, %7 : vector<64x32xf32>
    %c0_5 = arith.constant 0 : index
    %c0_6 = arith.constant 0 : index
    %9 = vector.load %arg4[%c0_5, %c0_6] : memref<2x64xf32, #tpu.memory_space<vmem>>, vector<2x64xf32>
    %c0_7 = arith.constant 0 : index
    %c0_8 = arith.constant 0 : index
    %10 = vector.load %arg5[%c0_7, %c0_8] : memref<32x16xf32, #tpu.memory_space<vmem>>, vector<32x16xf32>
    %cst_9 = arith.constant dense<0.000000e+00> : vector<2x32xf32>
    %11 = tpu.matmul %9, %8, %cst_9 {dimension_numbers = #tpu.dot_dimension_numbers<[1], [0], [0], [1], [0, 0, 1, 1], [], []>} : vector<2x64xf32>, vector<64x32xf32>, vector<2x32xf32> -> vector<2x32xf32>
    %12 = arith.mulf %8, %8 : vector<64x32xf32>
    %cst_10 = arith.constant dense<0.000000e+00> : vector<2x32xf32>
    %13 = tpu.matmul %9, %12, %cst_10 {dimension_numbers = #tpu.dot_dimension_numbers<[1], [0], [0], [1], [0, 0, 1, 1], [], []>} : vector<2x64xf32>, vector<64x32xf32>, vector<2x32xf32> -> vector<2x32xf32>
    %cst_11 = arith.constant dense<0.000000e+00> : vector<2x16xf32>
    %14 = tpu.matmul %11, %10, %cst_11 {dimension_numbers = #tpu.dot_dimension_numbers<[1], [0], [0], [1], [0, 0, 1, 1], [], []>} : vector<2x32xf32>, vector<32x16xf32>, vector<2x16xf32> -> vector<2x16xf32>
    %cst_12 = arith.constant dense<0.000000e+00> : vector<2x16xf32>
    %15 = tpu.matmul %13, %10, %cst_12 {dimension_numbers = #tpu.dot_dimension_numbers<[1], [0], [0], [1], [0, 0, 1, 1], [], []>} : vector<2x32xf32>, vector<32x16xf32>, vector<2x16xf32> -> vector<2x16xf32>
    %16 = arith.mulf %14, %14 : vector<2x16xf32>
    %17 = arith.subf %15, %16 : vector<2x16xf32>
    %cst_13 = arith.constant 0.000000e+00 : f32
    %18 = vector.broadcast %cst_13 : f32 to vector<2x16xf32>
    %19 = arith.maximumf %17, %18 : vector<2x16xf32>
    %cst_14 = arith.constant 9.99999974E-6 : f32
    %20 = vector.broadcast %cst_14 : f32 to vector<2x16xf32>
    %21 = arith.addf %19, %20 : vector<2x16xf32>
    %22 = math.rsqrt %21 : vector<2x16xf32>
    %c0_15 = arith.constant 0 : index
    %c0_16 = arith.constant 0 : index
    %23 = vector.load %arg6[%c0_15, %c0_16] : memref<16x32xf32, #tpu.memory_space<vmem>>, vector<16x32xf32>
    %cst_17 = arith.constant dense<0.000000e+00> : vector<2x32xf32>
    %24 = tpu.matmul %14, %23, %cst_17 {dimension_numbers = #tpu.dot_dimension_numbers<[1], [0], [0], [1], [0, 0, 1, 1], [], []>} : vector<2x16xf32>, vector<16x32xf32>, vector<2x32xf32> -> vector<2x32xf32>
    %cst_18 = arith.constant dense<0.000000e+00> : vector<2x32xf32>
    %25 = tpu.matmul %22, %23, %cst_18 {dimension_numbers = #tpu.dot_dimension_numbers<[1], [0], [0], [1], [0, 0, 1, 1], [], []>} : vector<2x16xf32>, vector<16x32xf32>, vector<2x32xf32> -> vector<2x32xf32>
    %26 = vector.broadcast %2 : vector<1x32xf32> to vector<2x32xf32>
    %27 = arith.mulf %26, %25 : vector<2x32xf32>
    %28 = arith.mulf %24, %27 : vector<2x32xf32>
    %29 = vector.broadcast %3 : vector<1x32xf32> to vector<2x32xf32>
    %30 = arith.subf %29, %28 : vector<2x32xf32>
    %31 = vector.shape_cast %8 : vector<64x32xf32> to vector<2x32x32xf32>
    %32 = vector.shape_cast %27 : vector<2x32xf32> to vector<2x1x32xf32>
    %33 = vector.broadcast %32 : vector<2x1x32xf32> to vector<2x32x32xf32>
    %34 = arith.mulf %31, %33 : vector<2x32x32xf32>
    %35 = vector.shape_cast %30 : vector<2x32xf32> to vector<2x1x32xf32>
    %36 = vector.broadcast %35 : vector<2x1x32xf32> to vector<2x32x32xf32>
    %37 = arith.addf %34, %36 : vector<2x32x32xf32>
    %cst_19 = arith.constant 0.000000e+00 : f32
    %38 = vector.broadcast %cst_19 : f32 to vector<2x32x32xf32>
    %39 = arith.maximumf %37, %38 : vector<2x32x32xf32>
    %40 = vector.shape_cast %39 : vector<2x32x32xf32> to vector<64x32xf32>
    %41 = arith.truncf %40 : vector<64x32xf32> to vector<64x32xbf16>
    %c0_20 = arith.constant 0 : index
    %c0_21 = arith.constant 0 : index
    %42 = vector.load %arg7[%c0_20, %c0_21] : memref<32x256xbf16, #tpu.memory_space<vmem>>, vector<32x256xbf16>
    %cst_22 = arith.constant dense<0.000000e+00> : vector<64x256xf32>
    %43 = tpu.matmul %41, %42, %cst_22 {dimension_numbers = #tpu.dot_dimension_numbers<[1], [0], [0], [1], [0, 0, 1, 1], [], []>} : vector<64x32xbf16>, vector<32x256xbf16>, vector<64x256xf32> -> vector<64x256xf32>
    %c0_23 = arith.constant 0 : index
    %c0_24 = arith.constant 0 : index
    %44 = vector.load %arg8[%c0_23, %c0_24] : memref<1x256xf32, #tpu.memory_space<vmem>>, vector<1x256xf32>
    %45 = vector.broadcast %44 : vector<1x256xf32> to vector<64x256xf32>
    %46 = arith.addf %43, %45 : vector<64x256xf32>
    %c0_25 = arith.constant 0 : index
    %c0_26 = arith.constant 0 : index
    %47 = vector.load %arg41[%c0_25, %c0_26] : memref<64x256xf32, #tpu.memory_space<vmem>>, vector<64x256xf32>
    tpu.vector_store %arg41[%c0_25, %c0_26], %46 {strides = array<i32>} : memref<64x256xf32, #tpu.memory_space<vmem>>, vector<64x256xf32>,
    %c0_27 = arith.constant 0 : index
    %c0_28 = arith.constant 0 : index
    %48 = vector.load %arg11[%c0_27, %c0_28] : memref<3x32xf32, #tpu.memory_space<vmem>>, vector<3x32xf32>
    %49 = vector.extract_strided_slice %48 {offsets = [0, 0], sizes = [1, 32], strides = [1, 1]} : vector<3x32xf32> to vector<1x32xf32>
    %50 = vector.extract_strided_slice %48 {offsets = [1, 0], sizes = [1, 32], strides = [1, 1]} : vector<3x32xf32> to vector<1x32xf32>
    %51 = vector.extract_strided_slice %48 {offsets = [2, 0], sizes = [1, 32], strides = [1, 1]} : vector<3x32xf32> to vector<1x32xf32>
    %c0_29 = arith.constant 0 : index
    %c0_30 = arith.constant 0 : index
    %52 = vector.load %arg9[%c0_29, %c0_30] : memref<32x32xbf16, #tpu.memory_space<vmem>>, vector<32x32xbf16>
    %c0_31 = arith.constant 0 : index
    %c0_32 = arith.constant 0 : index
    %53 = vector.load %arg10[%c0_31, %c0_32] : memref<32x32xbf16, #tpu.memory_space<vmem>>, vector<32x32xbf16>
    %cst_33 = arith.constant dense<0.000000e+00> : vector<32x32xf32>
    %54 = tpu.matmul %52, %53, %cst_33 {dimension_numbers = #tpu.dot_dimension_numbers<[1], [0], [0], [1], [0, 0, 1, 1], [], []>} : vector<32x32xbf16>, vector<32x32xbf16>, vector<32x32xf32> -> vector<32x32xf32>
    %55 = vector.broadcast %49 : vector<1x32xf32> to vector<32x32xf32>
    %56 = arith.addf %54, %55 : vector<32x32xf32>
    %c0_34 = arith.constant 0 : index
    %c0_35 = arith.constant 0 : index
    %57 = vector.load %arg12[%c0_34, %c0_35] : memref<2x32xf32, #tpu.memory_space<vmem>>, vector<2x32xf32>
    %c0_36 = arith.constant 0 : index
    %c0_37 = arith.constant 0 : index
    %58 = vector.load %arg13[%c0_36, %c0_37] : memref<32x16xf32, #tpu.memory_space<vmem>>, vector<32x16xf32>
    %cst_38 = arith.constant dense<0.000000e+00> : vector<2x32xf32>
    %59 = tpu.matmul %57, %56, %cst_38 {dimension_numbers = #tpu.dot_dimension_numbers<[1], [0], [0], [1], [0, 0, 1, 1], [], []>} : vector<2x32xf32>, vector<32x32xf32>, vector<2x32xf32> -> vector<2x32xf32>
    %60 = arith.mulf %56, %56 : vector<32x32xf32>
    %cst_39 = arith.constant dense<0.000000e+00> : vector<2x32xf32>
    %61 = tpu.matmul %57, %60, %cst_39 {dimension_numbers = #tpu.dot_dimension_numbers<[1], [0], [0], [1], [0, 0, 1, 1], [], []>} : vector<2x32xf32>, vector<32x32xf32>, vector<2x32xf32> -> vector<2x32xf32>
    %cst_40 = arith.constant dense<0.000000e+00> : vector<2x16xf32>
    %62 = tpu.matmul %59, %58, %cst_40 {dimension_numbers = #tpu.dot_dimension_numbers<[1], [0], [0], [1], [0, 0, 1, 1], [], []>} : vector<2x32xf32>, vector<32x16xf32>, vector<2x16xf32> -> vector<2x16xf32>
    %cst_41 = arith.constant dense<0.000000e+00> : vector<2x16xf32>
    %63 = tpu.matmul %61, %58, %cst_41 {dimension_numbers = #tpu.dot_dimension_numbers<[1], [0], [0], [1], [0, 0, 1, 1], [], []>} : vector<2x32xf32>, vector<32x16xf32>, vector<2x16xf32> -> vector<2x16xf32>
    %64 = arith.mulf %62, %62 : vector<2x16xf32>
    %65 = arith.subf %63, %64 : vector<2x16xf32>
    %cst_42 = arith.constant 0.000000e+00 : f32
    %66 = vector.broadcast %cst_42 : f32 to vector<2x16xf32>
    %67 = arith.maximumf %65, %66 : vector<2x16xf32>
    %cst_43 = arith.constant 9.99999974E-6 : f32
    %68 = vector.broadcast %cst_43 : f32 to vector<2x16xf32>
    %69 = arith.addf %67, %68 : vector<2x16xf32>
    %70 = math.rsqrt %69 : vector<2x16xf32>
    %c0_44 = arith.constant 0 : index
    %c0_45 = arith.constant 0 : index
    %71 = vector.load %arg14[%c0_44, %c0_45] : memref<16x32xf32, #tpu.memory_space<vmem>>, vector<16x32xf32>
    %cst_46 = arith.constant dense<0.000000e+00> : vector<2x32xf32>
    %72 = tpu.matmul %62, %71, %cst_46 {dimension_numbers = #tpu.dot_dimension_numbers<[1], [0], [0], [1], [0, 0, 1, 1], [], []>} : vector<2x16xf32>, vector<16x32xf32>, vector<2x32xf32> -> vector<2x32xf32>
    %cst_47 = arith.constant dense<0.000000e+00> : vector<2x32xf32>
    %73 = tpu.matmul %70, %71, %cst_47 {dimension_numbers = #tpu.dot_dimension_numbers<[1], [0], [0], [1], [0, 0, 1, 1], [], []>} : vector<2x16xf32>, vector<16x32xf32>, vector<2x32xf32> -> vector<2x32xf32>
    %74 = vector.broadcast %50 : vector<1x32xf32> to vector<2x32xf32>
    %75 = arith.mulf %74, %73 : vector<2x32xf32>
    %76 = arith.mulf %72, %75 : vector<2x32xf32>
    %77 = vector.broadcast %51 : vector<1x32xf32> to vector<2x32xf32>
    %78 = arith.subf %77, %76 : vector<2x32xf32>
    %79 = vector.shape_cast %56 : vector<32x32xf32> to vector<2x16x32xf32>
    %80 = vector.shape_cast %75 : vector<2x32xf32> to vector<2x1x32xf32>
    %81 = vector.broadcast %80 : vector<2x1x32xf32> to vector<2x16x32xf32>
    %82 = arith.mulf %79, %81 : vector<2x16x32xf32>
    %83 = vector.shape_cast %78 : vector<2x32xf32> to vector<2x1x32xf32>
    %84 = vector.broadcast %83 : vector<2x1x32xf32> to vector<2x16x32xf32>
    %85 = arith.addf %82, %84 : vector<2x16x32xf32>
    %cst_48 = arith.constant 0.000000e+00 : f32
    %86 = vector.broadcast %cst_48 : f32 to vector<2x16x32xf32>
    %87 = arith.maximumf %85, %86 : vector<2x16x32xf32>
    %88 = vector.shape_cast %87 : vector<2x16x32xf32> to vector<32x32xf32>
    %89 = arith.truncf %88 : vector<32x32xf32> to vector<32x32xbf16>
    %c0_49 = arith.constant 0 : index
    %c0_50 = arith.constant 0 : index
    %90 = vector.load %arg15[%c0_49, %c0_50] : memref<32x128xbf16, #tpu.memory_space<vmem>>, vector<32x128xbf16>
    %cst_51 = arith.constant dense<0.000000e+00> : vector<32x128xf32>
    %91 = tpu.matmul %89, %90, %cst_51 {dimension_numbers = #tpu.dot_dimension_numbers<[1], [0], [0], [1], [0, 0, 1, 1], [], []>} : vector<32x32xbf16>, vector<32x128xbf16>, vector<32x128xf32> -> vector<32x128xf32>
    %c0_52 = arith.constant 0 : index
    %c0_53 = arith.constant 0 : index
    %92 = vector.load %arg16[%c0_52, %c0_53] : memref<1x128xf32, #tpu.memory_space<vmem>>, vector<1x128xf32>
    %93 = vector.broadcast %92 : vector<1x128xf32> to vector<32x128xf32>
    %94 = arith.addf %91, %93 : vector<32x128xf32>
    %c0_54 = arith.constant 0 : index
    %c0_55 = arith.constant 0 : index
    %95 = vector.load %arg42[%c0_54, %c0_55] : memref<32x128xf32, #tpu.memory_space<vmem>>, vector<32x128xf32>
    tpu.vector_store %arg42[%c0_54, %c0_55], %94 {strides = array<i32>} : memref<32x128xf32, #tpu.memory_space<vmem>>, vector<32x128xf32>,
    %c0_56 = arith.constant 0 : index
    %c0_57 = arith.constant 0 : index
    %96 = vector.load %arg19[%c0_56, %c0_57] : memref<3x32xf32, #tpu.memory_space<vmem>>, vector<3x32xf32>
    %97 = vector.extract_strided_slice %96 {offsets = [0, 0], sizes = [1, 32], strides = [1, 1]} : vector<3x32xf32> to vector<1x32xf32>
    %98 = vector.extract_strided_slice %96 {offsets = [1, 0], sizes = [1, 32], strides = [1, 1]} : vector<3x32xf32> to vector<1x32xf32>
    %99 = vector.extract_strided_slice %96 {offsets = [2, 0], sizes = [1, 32], strides = [1, 1]} : vector<3x32xf32> to vector<1x32xf32>
    %c0_58 = arith.constant 0 : index
    %c0_59 = arith.constant 0 : index
    %100 = vector.load %arg17[%c0_58, %c0_59] : memref<16x32xbf16, #tpu.memory_space<vmem>>, vector<16x32xbf16>
    %c0_60 = arith.constant 0 : index
    %c0_61 = arith.constant 0 : index
    %101 = vector.load %arg18[%c0_60, %c0_61] : memref<32x32xbf16, #tpu.memory_space<vmem>>, vector<32x32xbf16>
    %cst_62 = arith.constant dense<0.000000e+00> : vector<16x32xf32>
    %102 = tpu.matmul %100, %101, %cst_62 {dimension_numbers = #tpu.dot_dimension_numbers<[1], [0], [0], [1], [0, 0, 1, 1], [], []>} : vector<16x32xbf16>, vector<32x32xbf16>, vector<16x32xf32> -> vector<16x32xf32>
    %103 = vector.broadcast %97 : vector<1x32xf32> to vector<16x32xf32>
    %104 = arith.addf %102, %103 : vector<16x32xf32>
    %c0_63 = arith.constant 0 : index
    %c0_64 = arith.constant 0 : index
    %105 = vector.load %arg20[%c0_63, %c0_64] : memref<2x16xf32, #tpu.memory_space<vmem>>, vector<2x16xf32>
    %c0_65 = arith.constant 0 : index
    %c0_66 = arith.constant 0 : index
    %106 = vector.load %arg21[%c0_65, %c0_66] : memref<32x16xf32, #tpu.memory_space<vmem>>, vector<32x16xf32>
    %cst_67 = arith.constant dense<0.000000e+00> : vector<2x32xf32>
    %107 = tpu.matmul %105, %104, %cst_67 {dimension_numbers = #tpu.dot_dimension_numbers<[1], [0], [0], [1], [0, 0, 1, 1], [], []>} : vector<2x16xf32>, vector<16x32xf32>, vector<2x32xf32> -> vector<2x32xf32>
    %108 = arith.mulf %104, %104 : vector<16x32xf32>
    %cst_68 = arith.constant dense<0.000000e+00> : vector<2x32xf32>
    %109 = tpu.matmul %105, %108, %cst_68 {dimension_numbers = #tpu.dot_dimension_numbers<[1], [0], [0], [1], [0, 0, 1, 1], [], []>} : vector<2x16xf32>, vector<16x32xf32>, vector<2x32xf32> -> vector<2x32xf32>
    %cst_69 = arith.constant dense<0.000000e+00> : vector<2x16xf32>
    %110 = tpu.matmul %107, %106, %cst_69 {dimension_numbers = #tpu.dot_dimension_numbers<[1], [0], [0], [1], [0, 0, 1, 1], [], []>} : vector<2x32xf32>, vector<32x16xf32>, vector<2x16xf32> -> vector<2x16xf32>
    %cst_70 = arith.constant dense<0.000000e+00> : vector<2x16xf32>
    %111 = tpu.matmul %109, %106, %cst_70 {dimension_numbers = #tpu.dot_dimension_numbers<[1], [0], [0], [1], [0, 0, 1, 1], [], []>} : vector<2x32xf32>, vector<32x16xf32>, vector<2x16xf32> -> vector<2x16xf32>
    %112 = arith.mulf %110, %110 : vector<2x16xf32>
    %113 = arith.subf %111, %112 : vector<2x16xf32>
    %cst_71 = arith.constant 0.000000e+00 : f32
    %114 = vector.broadcast %cst_71 : f32 to vector<2x16xf32>
    %115 = arith.maximumf %113, %114 : vector<2x16xf32>
    %cst_72 = arith.constant 9.99999974E-6 : f32
    %116 = vector.broadcast %cst_72 : f32 to vector<2x16xf32>
    %117 = arith.addf %115, %116 : vector<2x16xf32>
    %118 = math.rsqrt %117 : vector<2x16xf32>
    %c0_73 = arith.constant 0 : index
    %c0_74 = arith.constant 0 : index
    %119 = vector.load %arg22[%c0_73, %c0_74] : memref<16x32xf32, #tpu.memory_space<vmem>>, vector<16x32xf32>
    %cst_75 = arith.constant dense<0.000000e+00> : vector<2x32xf32>
    %120 = tpu.matmul %110, %119, %cst_75 {dimension_numbers = #tpu.dot_dimension_numbers<[1], [0], [0], [1], [0, 0, 1, 1], [], []>} : vector<2x16xf32>, vector<16x32xf32>, vector<2x32xf32> -> vector<2x32xf32>
    %cst_76 = arith.constant dense<0.000000e+00> : vector<2x32xf32>
    %121 = tpu.matmul %118, %119, %cst_76 {dimension_numbers = #tpu.dot_dimension_numbers<[1], [0], [0], [1], [0, 0, 1, 1], [], []>} : vector<2x16xf32>, vector<16x32xf32>, vector<2x32xf32> -> vector<2x32xf32>
    %122 = vector.broadcast %98 : vector<1x32xf32> to vector<2x32xf32>
    %123 = arith.mulf %122, %121 : vector<2x32xf32>
    %124 = arith.mulf %120, %123 : vector<2x32xf32>
    %125 = vector.broadcast %99 : vector<1x32xf32> to vector<2x32xf32>
    %126 = arith.subf %125, %124 : vector<2x32xf32>
    %127 = vector.shape_cast %104 : vector<16x32xf32> to vector<2x8x32xf32>
    %128 = vector.shape_cast %123 : vector<2x32xf32> to vector<2x1x32xf32>
    %129 = vector.broadcast %128 : vector<2x1x32xf32> to vector<2x8x32xf32>
    %130 = arith.mulf %127, %129 : vector<2x8x32xf32>
    %131 = vector.shape_cast %126 : vector<2x32xf32> to vector<2x1x32xf32>
    %132 = vector.broadcast %131 : vector<2x1x32xf32> to vector<2x8x32xf32>
    %133 = arith.addf %130, %132 : vector<2x8x32xf32>
    %cst_77 = arith.constant 0.000000e+00 : f32
    %134 = vector.broadcast %cst_77 : f32 to vector<2x8x32xf32>
    %135 = arith.maximumf %133, %134 : vector<2x8x32xf32>
    %136 = vector.shape_cast %135 : vector<2x8x32xf32> to vector<16x32xf32>
    %137 = arith.truncf %136 : vector<16x32xf32> to vector<16x32xbf16>
    %c0_78 = arith.constant 0 : index
    %c0_79 = arith.constant 0 : index
    %138 = vector.load %arg23[%c0_78, %c0_79] : memref<32x64xbf16, #tpu.memory_space<vmem>>, vector<32x64xbf16>
    %cst_80 = arith.constant dense<0.000000e+00> : vector<16x64xf32>
    %139 = tpu.matmul %137, %138, %cst_80 {dimension_numbers = #tpu.dot_dimension_numbers<[1], [0], [0], [1], [0, 0, 1, 1], [], []>} : vector<16x32xbf16>, vector<32x64xbf16>, vector<16x64xf32> -> vector<16x64xf32>
    %c0_81 = arith.constant 0 : index
    %c0_82 = arith.constant 0 : index
    %140 = vector.load %arg24[%c0_81, %c0_82] : memref<1x64xf32, #tpu.memory_space<vmem>>, vector<1x64xf32>
    %141 = vector.broadcast %140 : vector<1x64xf32> to vector<16x64xf32>
    %142 = arith.addf %139, %141 : vector<16x64xf32>
    %c0_83 = arith.constant 0 : index
    %c0_84 = arith.constant 0 : index
    %143 = vector.load %arg43[%c0_83, %c0_84] : memref<16x64xf32, #tpu.memory_space<vmem>>, vector<16x64xf32>
    tpu.vector_store %arg43[%c0_83, %c0_84], %142 {strides = array<i32>} : memref<16x64xf32, #tpu.memory_space<vmem>>, vector<16x64xf32>,
    %c0_85 = arith.constant 0 : index
    %c0_86 = arith.constant 0 : index
    %144 = vector.load %arg27[%c0_85, %c0_86] : memref<3x32xf32, #tpu.memory_space<vmem>>, vector<3x32xf32>
    %145 = vector.extract_strided_slice %144 {offsets = [0, 0], sizes = [1, 32], strides = [1, 1]} : vector<3x32xf32> to vector<1x32xf32>
    %146 = vector.extract_strided_slice %144 {offsets = [1, 0], sizes = [1, 32], strides = [1, 1]} : vector<3x32xf32> to vector<1x32xf32>
    %147 = vector.extract_strided_slice %144 {offsets = [2, 0], sizes = [1, 32], strides = [1, 1]} : vector<3x32xf32> to vector<1x32xf32>
    %c0_87 = arith.constant 0 : index
    %c0_88 = arith.constant 0 : index
    %148 = vector.load %arg25[%c0_87, %c0_88] : memref<16x32xbf16, #tpu.memory_space<vmem>>, vector<16x32xbf16>
    %c0_89 = arith.constant 0 : index
    %c0_90 = arith.constant 0 : index
    %149 = vector.load %arg26[%c0_89, %c0_90] : memref<32x32xbf16, #tpu.memory_space<vmem>>, vector<32x32xbf16>
    %cst_91 = arith.constant dense<0.000000e+00> : vector<16x32xf32>
    %150 = tpu.matmul %148, %149, %cst_91 {dimension_numbers = #tpu.dot_dimension_numbers<[1], [0], [0], [1], [0, 0, 1, 1], [], []>} : vector<16x32xbf16>, vector<32x32xbf16>, vector<16x32xf32> -> vector<16x32xf32>
    %151 = vector.broadcast %145 : vector<1x32xf32> to vector<16x32xf32>
    %152 = arith.addf %150, %151 : vector<16x32xf32>
    %c0_92 = arith.constant 0 : index
    %c0_93 = arith.constant 0 : index
    %153 = vector.load %arg28[%c0_92, %c0_93] : memref<2x16xf32, #tpu.memory_space<vmem>>, vector<2x16xf32>
    %c0_94 = arith.constant 0 : index
    %c0_95 = arith.constant 0 : index
    %154 = vector.load %arg29[%c0_94, %c0_95] : memref<32x16xf32, #tpu.memory_space<vmem>>, vector<32x16xf32>
    %cst_96 = arith.constant dense<0.000000e+00> : vector<2x32xf32>
    %155 = tpu.matmul %153, %152, %cst_96 {dimension_numbers = #tpu.dot_dimension_numbers<[1], [0], [0], [1], [0, 0, 1, 1], [], []>} : vector<2x16xf32>, vector<16x32xf32>, vector<2x32xf32> -> vector<2x32xf32>
    %156 = arith.mulf %152, %152 : vector<16x32xf32>
    %cst_97 = arith.constant dense<0.000000e+00> : vector<2x32xf32>
    %157 = tpu.matmul %153, %156, %cst_97 {dimension_numbers = #tpu.dot_dimension_numbers<[1], [0], [0], [1], [0, 0, 1, 1], [], []>} : vector<2x16xf32>, vector<16x32xf32>, vector<2x32xf32> -> vector<2x32xf32>
    %cst_98 = arith.constant dense<0.000000e+00> : vector<2x16xf32>
    %158 = tpu.matmul %155, %154, %cst_98 {dimension_numbers = #tpu.dot_dimension_numbers<[1], [0], [0], [1], [0, 0, 1, 1], [], []>} : vector<2x32xf32>, vector<32x16xf32>, vector<2x16xf32> -> vector<2x16xf32>
    %cst_99 = arith.constant dense<0.000000e+00> : vector<2x16xf32>
    %159 = tpu.matmul %157, %154, %cst_99 {dimension_numbers = #tpu.dot_dimension_numbers<[1], [0], [0], [1], [0, 0, 1, 1], [], []>} : vector<2x32xf32>, vector<32x16xf32>, vector<2x16xf32> -> vector<2x16xf32>
    %160 = arith.mulf %158, %158 : vector<2x16xf32>
    %161 = arith.subf %159, %160 : vector<2x16xf32>
    %cst_100 = arith.constant 0.000000e+00 : f32
    %162 = vector.broadcast %cst_100 : f32 to vector<2x16xf32>
    %163 = arith.maximumf %161, %162 : vector<2x16xf32>
    %cst_101 = arith.constant 9.99999974E-6 : f32
    %164 = vector.broadcast %cst_101 : f32 to vector<2x16xf32>
    %165 = arith.addf %163, %164 : vector<2x16xf32>
    %166 = math.rsqrt %165 : vector<2x16xf32>
    %c0_102 = arith.constant 0 : index
    %c0_103 = arith.constant 0 : index
    %167 = vector.load %arg30[%c0_102, %c0_103] : memref<16x32xf32, #tpu.memory_space<vmem>>, vector<16x32xf32>
    %cst_104 = arith.constant dense<0.000000e+00> : vector<2x32xf32>
    %168 = tpu.matmul %158, %167, %cst_104 {dimension_numbers = #tpu.dot_dimension_numbers<[1], [0], [0], [1], [0, 0, 1, 1], [], []>} : vector<2x16xf32>, vector<16x32xf32>, vector<2x32xf32> -> vector<2x32xf32>
    %cst_105 = arith.constant dense<0.000000e+00> : vector<2x32xf32>
    %169 = tpu.matmul %166, %167, %cst_105 {dimension_numbers = #tpu.dot_dimension_numbers<[1], [0], [0], [1], [0, 0, 1, 1], [], []>} : vector<2x16xf32>, vector<16x32xf32>, vector<2x32xf32> -> vector<2x32xf32>
    %170 = vector.broadcast %146 : vector<1x32xf32> to vector<2x32xf32>
    %171 = arith.mulf %170, %169 : vector<2x32xf32>
    %172 = arith.mulf %168, %171 : vector<2x32xf32>
    %173 = vector.broadcast %147 : vector<1x32xf32> to vector<2x32xf32>
    %174 = arith.subf %173, %172 : vector<2x32xf32>
    %175 = vector.shape_cast %152 : vector<16x32xf32> to vector<2x8x32xf32>
    %176 = vector.shape_cast %171 : vector<2x32xf32> to vector<2x1x32xf32>
    %177 = vector.broadcast %176 : vector<2x1x32xf32> to vector<2x8x32xf32>
    %178 = arith.mulf %175, %177 : vector<2x8x32xf32>
    %179 = vector.shape_cast %174 : vector<2x32xf32> to vector<2x1x32xf32>
    %180 = vector.broadcast %179 : vector<2x1x32xf32> to vector<2x8x32xf32>
    %181 = arith.addf %178, %180 : vector<2x8x32xf32>
    %cst_106 = arith.constant 0.000000e+00 : f32
    %182 = vector.broadcast %cst_106 : f32 to vector<2x8x32xf32>
    %183 = arith.maximumf %181, %182 : vector<2x8x32xf32>
    %184 = vector.shape_cast %183 : vector<2x8x32xf32> to vector<16x32xf32>
    %185 = arith.truncf %184 : vector<16x32xf32> to vector<16x32xbf16>
    %c0_107 = arith.constant 0 : index
    %c0_108 = arith.constant 0 : index
    %186 = vector.load %arg31[%c0_107, %c0_108] : memref<32x32xbf16, #tpu.memory_space<vmem>>, vector<32x32xbf16>
    %cst_109 = arith.constant dense<0.000000e+00> : vector<16x32xf32>
    %187 = tpu.matmul %185, %186, %cst_109 {dimension_numbers = #tpu.dot_dimension_numbers<[1], [0], [0], [1], [0, 0, 1, 1], [], []>} : vector<16x32xbf16>, vector<32x32xbf16>, vector<16x32xf32> -> vector<16x32xf32>
    %c0_110 = arith.constant 0 : index
    %c0_111 = arith.constant 0 : index
    %188 = vector.load %arg32[%c0_110, %c0_111] : memref<1x32xf32, #tpu.memory_space<vmem>>, vector<1x32xf32>
    %189 = vector.broadcast %188 : vector<1x32xf32> to vector<16x32xf32>
    %190 = arith.addf %187, %189 : vector<16x32xf32>
    %c0_112 = arith.constant 0 : index
    %c0_113 = arith.constant 0 : index
    %191 = vector.load %arg44[%c0_112, %c0_113] : memref<16x32xf32, #tpu.memory_space<vmem>>, vector<16x32xf32>
    tpu.vector_store %arg44[%c0_112, %c0_113], %190 {strides = array<i32>} : memref<16x32xf32, #tpu.memory_space<vmem>>, vector<16x32xf32>,
    %c0_114 = arith.constant 0 : index
    %c0_115 = arith.constant 0 : index
    %192 = vector.load %arg35[%c0_114, %c0_115] : memref<3x32xf32, #tpu.memory_space<vmem>>, vector<3x32xf32>
    %193 = vector.extract_strided_slice %192 {offsets = [0, 0], sizes = [1, 32], strides = [1, 1]} : vector<3x32xf32> to vector<1x32xf32>
    %194 = vector.extract_strided_slice %192 {offsets = [1, 0], sizes = [1, 32], strides = [1, 1]} : vector<3x32xf32> to vector<1x32xf32>
    %195 = vector.extract_strided_slice %192 {offsets = [2, 0], sizes = [1, 32], strides = [1, 1]} : vector<3x32xf32> to vector<1x32xf32>
    %c0_116 = arith.constant 0 : index
    %c0_117 = arith.constant 0 : index
    %196 = vector.load %arg33[%c0_116, %c0_117] : memref<16x32xbf16, #tpu.memory_space<vmem>>, vector<16x32xbf16>
    %c0_118 = arith.constant 0 : index
    %c0_119 = arith.constant 0 : index
    %197 = vector.load %arg34[%c0_118, %c0_119] : memref<32x32xbf16, #tpu.memory_space<vmem>>, vector<32x32xbf16>
    %cst_120 = arith.constant dense<0.000000e+00> : vector<16x32xf32>
    %198 = tpu.matmul %196, %197, %cst_120 {dimension_numbers = #tpu.dot_dimension_numbers<[1], [0], [0], [1], [0, 0, 1, 1], [], []>} : vector<16x32xbf16>, vector<32x32xbf16>, vector<16x32xf32> -> vector<16x32xf32>
    %199 = vector.broadcast %193 : vector<1x32xf32> to vector<16x32xf32>
    %200 = arith.addf %198, %199 : vector<16x32xf32>
    %c0_121 = arith.constant 0 : index
    %c0_122 = arith.constant 0 : index
    %201 = vector.load %arg36[%c0_121, %c0_122] : memref<2x16xf32, #tpu.memory_space<vmem>>, vector<2x16xf32>
    %c0_123 = arith.constant 0 : index
    %c0_124 = arith.constant 0 : index
    %202 = vector.load %arg37[%c0_123, %c0_124] : memref<32x16xf32, #tpu.memory_space<vmem>>, vector<32x16xf32>
    %cst_125 = arith.constant dense<0.000000e+00> : vector<2x32xf32>
    %203 = tpu.matmul %201, %200, %cst_125 {dimension_numbers = #tpu.dot_dimension_numbers<[1], [0], [0], [1], [0, 0, 1, 1], [], []>} : vector<2x16xf32>, vector<16x32xf32>, vector<2x32xf32> -> vector<2x32xf32>
    %204 = arith.mulf %200, %200 : vector<16x32xf32>
    %cst_126 = arith.constant dense<0.000000e+00> : vector<2x32xf32>
    %205 = tpu.matmul %201, %204, %cst_126 {dimension_numbers = #tpu.dot_dimension_numbers<[1], [0], [0], [1], [0, 0, 1, 1], [], []>} : vector<2x16xf32>, vector<16x32xf32>, vector<2x32xf32> -> vector<2x32xf32>
    %cst_127 = arith.constant dense<0.000000e+00> : vector<2x16xf32>
    %206 = tpu.matmul %203, %202, %cst_127 {dimension_numbers = #tpu.dot_dimension_numbers<[1], [0], [0], [1], [0, 0, 1, 1], [], []>} : vector<2x32xf32>, vector<32x16xf32>, vector<2x16xf32> -> vector<2x16xf32>
    %cst_128 = arith.constant dense<0.000000e+00> : vector<2x16xf32>
    %207 = tpu.matmul %205, %202, %cst_128 {dimension_numbers = #tpu.dot_dimension_numbers<[1], [0], [0], [1], [0, 0, 1, 1], [], []>} : vector<2x32xf32>, vector<32x16xf32>, vector<2x16xf32> -> vector<2x16xf32>
    %208 = arith.mulf %206, %206 : vector<2x16xf32>
    %209 = arith.subf %207, %208 : vector<2x16xf32>
    %cst_129 = arith.constant 0.000000e+00 : f32
    %210 = vector.broadcast %cst_129 : f32 to vector<2x16xf32>
    %211 = arith.maximumf %209, %210 : vector<2x16xf32>
    %cst_130 = arith.constant 9.99999974E-6 : f32
    %212 = vector.broadcast %cst_130 : f32 to vector<2x16xf32>
    %213 = arith.addf %211, %212 : vector<2x16xf32>
    %214 = math.rsqrt %213 : vector<2x16xf32>
    %c0_131 = arith.constant 0 : index
    %c0_132 = arith.constant 0 : index
    %215 = vector.load %arg38[%c0_131, %c0_132] : memref<16x32xf32, #tpu.memory_space<vmem>>, vector<16x32xf32>
    %cst_133 = arith.constant dense<0.000000e+00> : vector<2x32xf32>
    %216 = tpu.matmul %206, %215, %cst_133 {dimension_numbers = #tpu.dot_dimension_numbers<[1], [0], [0], [1], [0, 0, 1, 1], [], []>} : vector<2x16xf32>, vector<16x32xf32>, vector<2x32xf32> -> vector<2x32xf32>
    %cst_134 = arith.constant dense<0.000000e+00> : vector<2x32xf32>
    %217 = tpu.matmul %214, %215, %cst_134 {dimension_numbers = #tpu.dot_dimension_numbers<[1], [0], [0], [1], [0, 0, 1, 1], [], []>} : vector<2x16xf32>, vector<16x32xf32>, vector<2x32xf32> -> vector<2x32xf32>
    %218 = vector.broadcast %194 : vector<1x32xf32> to vector<2x32xf32>
    %219 = arith.mulf %218, %217 : vector<2x32xf32>
    %220 = arith.mulf %216, %219 : vector<2x32xf32>
    %221 = vector.broadcast %195 : vector<1x32xf32> to vector<2x32xf32>
    %222 = arith.subf %221, %220 : vector<2x32xf32>
    %223 = vector.shape_cast %200 : vector<16x32xf32> to vector<2x8x32xf32>
    %224 = vector.shape_cast %219 : vector<2x32xf32> to vector<2x1x32xf32>
    %225 = vector.broadcast %224 : vector<2x1x32xf32> to vector<2x8x32xf32>
    %226 = arith.mulf %223, %225 : vector<2x8x32xf32>
    %227 = vector.shape_cast %222 : vector<2x32xf32> to vector<2x1x32xf32>
    %228 = vector.broadcast %227 : vector<2x1x32xf32> to vector<2x8x32xf32>
    %229 = arith.addf %226, %228 : vector<2x8x32xf32>
    %cst_135 = arith.constant 0.000000e+00 : f32
    %230 = vector.broadcast %cst_135 : f32 to vector<2x8x32xf32>
    %231 = arith.maximumf %229, %230 : vector<2x8x32xf32>
    %232 = vector.shape_cast %231 : vector<2x8x32xf32> to vector<16x32xf32>
    %233 = arith.truncf %232 : vector<16x32xf32> to vector<16x32xbf16>
    %c0_136 = arith.constant 0 : index
    %c0_137 = arith.constant 0 : index
    %234 = vector.load %arg39[%c0_136, %c0_137] : memref<32x16xbf16, #tpu.memory_space<vmem>>, vector<32x16xbf16>
    %cst_138 = arith.constant dense<0.000000e+00> : vector<16x16xf32>
    %235 = tpu.matmul %233, %234, %cst_138 {dimension_numbers = #tpu.dot_dimension_numbers<[1], [0], [0], [1], [0, 0, 1, 1], [], []>} : vector<16x32xbf16>, vector<32x16xbf16>, vector<16x16xf32> -> vector<16x16xf32>
    %c0_139 = arith.constant 0 : index
    %c0_140 = arith.constant 0 : index
    %236 = vector.load %arg40[%c0_139, %c0_140] : memref<1x16xf32, #tpu.memory_space<vmem>>, vector<1x16xf32>
    %237 = vector.broadcast %236 : vector<1x16xf32> to vector<16x16xf32>
    %238 = arith.addf %235, %237 : vector<16x16xf32>
    %c0_141 = arith.constant 0 : index
    %c0_142 = arith.constant 0 : index
    %239 = vector.load %arg45[%c0_141, %c0_142] : memref<16x16xf32, #tpu.memory_space<vmem>>, vector<16x16xf32>
    tpu.vector_store %arg45[%c0_141, %c0_142], %238 {strides = array<i32>} : memref<16x16xf32, #tpu.memory_space<vmem>>, vector<16x16xf32>,
    return
  }
  func.func @transform_0(%arg0: i32) -> (i32, i32) {
    %c0_i32 = arith.constant 0 : i32
    %c0_i32_0 = arith.constant 0 : i32
    %c0_i32_1 = arith.constant 0 : i32
    return %c0_i32, %c0_i32_0 : i32, i32
  }
  func.func @transform_1(%arg0: i32) -> (i32, i32) {
    %c0_i32 = arith.constant 0 : i32
    %c0_i32_0 = arith.constant 0 : i32
    %c0_i32_1 = arith.constant 0 : i32
    return %c0_i32, %c0_i32_0 : i32, i32
  }
  func.func @transform_2(%arg0: i32) -> (i32, i32) {
    %c0_i32 = arith.constant 0 : i32
    %c0_i32_0 = arith.constant 0 : i32
    %c0_i32_1 = arith.constant 0 : i32
    return %c0_i32, %c0_i32_0 : i32, i32
  }
  func.func @transform_3(%arg0: i32) -> (i32, i32) {
    %c0_i32 = arith.constant 0 : i32
    %c0_i32_0 = arith.constant 0 : i32
    %c0_i32_1 = arith.constant 0 : i32
    return %c0_i32, %c0_i32_0 : i32, i32
  }
  func.func @transform_4(%arg0: i32) -> (i32, i32) {
    %c0_i32 = arith.constant 0 : i32
    %c0_i32_0 = arith.constant 0 : i32
    %c0_i32_1 = arith.constant 0 : i32
    return %c0_i32, %c0_i32_0 : i32, i32
  }
  func.func @transform_5(%arg0: i32) -> (i32, i32) {
    %c0_i32 = arith.constant 0 : i32
    %c0_i32_0 = arith.constant 0 : i32
    %c0_i32_1 = arith.constant 0 : i32
    return %c0_i32, %c0_i32_0 : i32, i32
  }
  func.func @transform_6(%arg0: i32) -> (i32, i32) {
    %c0_i32 = arith.constant 0 : i32
    %c0_i32_0 = arith.constant 0 : i32
    %c0_i32_1 = arith.constant 0 : i32
    return %c0_i32, %c0_i32_0 : i32, i32
  }
  func.func @transform_7(%arg0: i32) -> (i32, i32) {
    %c0_i32 = arith.constant 0 : i32
    %c0_i32_0 = arith.constant 0 : i32
    %c0_i32_1 = arith.constant 0 : i32
    return %c0_i32, %c0_i32_0 : i32, i32
  }
  func.func @transform_8(%arg0: i32) -> (i32, i32) {
    %c0_i32 = arith.constant 0 : i32
    %c0_i32_0 = arith.constant 0 : i32
    %c0_i32_1 = arith.constant 0 : i32
    return %c0_i32, %c0_i32_0 : i32, i32
  }
  func.func @transform_9(%arg0: i32) -> (i32, i32) {
    %c0_i32 = arith.constant 0 : i32
    %c0_i32_0 = arith.constant 0 : i32
    %c0_i32_1 = arith.constant 0 : i32
    return %c0_i32, %c0_i32_0 : i32, i32
  }
  func.func @transform_10(%arg0: i32) -> (i32, i32) {
    %c0_i32 = arith.constant 0 : i32
    %c0_i32_0 = arith.constant 0 : i32
    %c0_i32_1 = arith.constant 0 : i32
    return %c0_i32, %c0_i32_0 : i32, i32
  }
  func.func @transform_11(%arg0: i32) -> (i32, i32) {
    %c0_i32 = arith.constant 0 : i32
    %c0_i32_0 = arith.constant 0 : i32
    %c0_i32_1 = arith.constant 0 : i32
    return %c0_i32, %c0_i32_0 : i32, i32
  }
  func.func @transform_12(%arg0: i32) -> (i32, i32) {
    %c0_i32 = arith.constant 0 : i32
    %c0_i32_0 = arith.constant 0 : i32
    %c0_i32_1 = arith.constant 0 : i32
    return %c0_i32, %c0_i32_0 : i32, i32
  }
  func.func @transform_13(%arg0: i32) -> (i32, i32) {
    %c0_i32 = arith.constant 0 : i32
    %c0_i32_0 = arith.constant 0 : i32
    %c0_i32_1 = arith.constant 0 : i32
    return %c0_i32, %c0_i32_0 : i32, i32
  }
  func.func @transform_14(%arg0: i32) -> (i32, i32) {
    %c0_i32 = arith.constant 0 : i32
    %c0_i32_0 = arith.constant 0 : i32
    %c0_i32_1 = arith.constant 0 : i32
    return %c0_i32, %c0_i32_0 : i32, i32
  }
  func.func @transform_15(%arg0: i32) -> (i32, i32) {
    %c0_i32 = arith.constant 0 : i32
    %c0_i32_0 = arith.constant 0 : i32
    %c0_i32_1 = arith.constant 0 : i32
    return %c0_i32, %c0_i32_0 : i32, i32
  }
  func.func @transform_16(%arg0: i32) -> (i32, i32) {
    %c0_i32 = arith.constant 0 : i32
    %c0_i32_0 = arith.constant 0 : i32
    %c0_i32_1 = arith.constant 0 : i32
    return %c0_i32, %c0_i32_0 : i32, i32
  }
  func.func @transform_17(%arg0: i32) -> (i32, i32) {
    %c0_i32 = arith.constant 0 : i32
    %c0_i32_0 = arith.constant 0 : i32
    %c0_i32_1 = arith.constant 0 : i32
    return %c0_i32, %c0_i32_0 : i32, i32
  }
  func.func @transform_18(%arg0: i32) -> (i32, i32) {
    %c0_i32 = arith.constant 0 : i32
    %c0_i32_0 = arith.constant 0 : i32
    %c0_i32_1 = arith.constant 0 : i32
    return %c0_i32, %c0_i32_0 : i32, i32
  }
  func.func @transform_19(%arg0: i32) -> (i32, i32) {
    %c0_i32 = arith.constant 0 : i32
    %c0_i32_0 = arith.constant 0 : i32
    %c0_i32_1 = arith.constant 0 : i32
    return %c0_i32, %c0_i32_0 : i32, i32
  }
  func.func @transform_20(%arg0: i32) -> (i32, i32) {
    %c0_i32 = arith.constant 0 : i32
    %c0_i32_0 = arith.constant 0 : i32
    %c0_i32_1 = arith.constant 0 : i32
    return %c0_i32, %c0_i32_0 : i32, i32
  }
  func.func @transform_21(%arg0: i32) -> (i32, i32) {
    %c0_i32 = arith.constant 0 : i32
    %c0_i32_0 = arith.constant 0 : i32
    %c0_i32_1 = arith.constant 0 : i32
    return %c0_i32, %c0_i32_0 : i32, i32
  }
  func.func @transform_22(%arg0: i32) -> (i32, i32) {
    %c0_i32 = arith.constant 0 : i32
    %c0_i32_0 = arith.constant 0 : i32
    %c0_i32_1 = arith.constant 0 : i32
    return %c0_i32, %c0_i32_0 : i32, i32
  }
  func.func @transform_23(%arg0: i32) -> (i32, i32) {
    %c0_i32 = arith.constant 0 : i32
    %c0_i32_0 = arith.constant 0 : i32
    %c0_i32_1 = arith.constant 0 : i32
    return %c0_i32, %c0_i32_0 : i32, i32
  }
  func.func @transform_24(%arg0: i32) -> (i32, i32) {
    %c0_i32 = arith.constant 0 : i32
    %c0_i32_0 = arith.constant 0 : i32
    %c0_i32_1 = arith.constant 0 : i32
    return %c0_i32, %c0_i32_0 : i32, i32
  }
  func.func @transform_25(%arg0: i32) -> (i32, i32) {
    %c0_i32 = arith.constant 0 : i32
    %c0_i32_0 = arith.constant 0 : i32
    %c0_i32_1 = arith.constant 0 : i32
    return %c0_i32, %c0_i32_0 : i32, i32
  }
  func.func @transform_26(%arg0: i32) -> (i32, i32) {
    %c0_i32 = arith.constant 0 : i32
    %c0_i32_0 = arith.constant 0 : i32
    %c0_i32_1 = arith.constant 0 : i32
    return %c0_i32, %c0_i32_0 : i32, i32
  }
  func.func @transform_27(%arg0: i32) -> (i32, i32) {
    %c0_i32 = arith.constant 0 : i32
    %c0_i32_0 = arith.constant 0 : i32
    %c0_i32_1 = arith.constant 0 : i32
    return %c0_i32, %c0_i32_0 : i32, i32
  }
  func.func @transform_28(%arg0: i32) -> (i32, i32) {
    %c0_i32 = arith.constant 0 : i32
    %c0_i32_0 = arith.constant 0 : i32
    %c0_i32_1 = arith.constant 0 : i32
    return %c0_i32, %c0_i32_0 : i32, i32
  }
  func.func @transform_29(%arg0: i32) -> (i32, i32) {
    %c0_i32 = arith.constant 0 : i32
    %c0_i32_0 = arith.constant 0 : i32
    %c0_i32_1 = arith.constant 0 : i32
    return %c0_i32, %c0_i32_0 : i32, i32
  }
  func.func @transform_30(%arg0: i32) -> (i32, i32) {
    %c0_i32 = arith.constant 0 : i32
    %c0_i32_0 = arith.constant 0 : i32
    %c0_i32_1 = arith.constant 0 : i32
    return %c0_i32, %c0_i32_0 : i32, i32
  }
  func.func @transform_31(%arg0: i32) -> (i32, i32) {
    %c0_i32 = arith.constant 0 : i32
    %c0_i32_0 = arith.constant 0 : i32
    %c0_i32_1 = arith.constant 0 : i32
    return %c0_i32, %c0_i32_0 : i32, i32
  }
  func.func @transform_32(%arg0: i32) -> (i32, i32) {
    %c0_i32 = arith.constant 0 : i32
    %c0_i32_0 = arith.constant 0 : i32
    %c0_i32_1 = arith.constant 0 : i32
    return %c0_i32, %c0_i32_0 : i32, i32
  }
  func.func @transform_33(%arg0: i32) -> (i32, i32) {
    %c0_i32 = arith.constant 0 : i32
    %c0_i32_0 = arith.constant 0 : i32
    %c0_i32_1 = arith.constant 0 : i32
    return %c0_i32, %c0_i32_0 : i32, i32
  }
  func.func @transform_34(%arg0: i32) -> (i32, i32) {
    %c0_i32 = arith.constant 0 : i32
    %c0_i32_0 = arith.constant 0 : i32
    %c0_i32_1 = arith.constant 0 : i32
    return %c0_i32, %c0_i32_0 : i32, i32
  }
  func.func @transform_35(%arg0: i32) -> (i32, i32) {
    %c0_i32 = arith.constant 0 : i32
    %c0_i32_0 = arith.constant 0 : i32
    %c0_i32_1 = arith.constant 0 : i32
    return %c0_i32, %c0_i32_0 : i32, i32
  }
  func.func @transform_36(%arg0: i32) -> (i32, i32) {
    %c0_i32 = arith.constant 0 : i32
    %c0_i32_0 = arith.constant 0 : i32
    %c0_i32_1 = arith.constant 0 : i32
    return %c0_i32, %c0_i32_0 : i32, i32
  }
  func.func @transform_37(%arg0: i32) -> (i32, i32) {
    %c0_i32 = arith.constant 0 : i32
    %c0_i32_0 = arith.constant 0 : i32
    %c0_i32_1 = arith.constant 0 : i32
    return %c0_i32, %c0_i32_0 : i32, i32
  }
  func.func @transform_38(%arg0: i32) -> (i32, i32) {
    %c0_i32 = arith.constant 0 : i32
    %c0_i32_0 = arith.constant 0 : i32
    %c0_i32_1 = arith.constant 0 : i32
    return %c0_i32, %c0_i32_0 : i32, i32
  }
  func.func @transform_39(%arg0: i32) -> (i32, i32) {
    %c0_i32 = arith.constant 0 : i32
    %c0_i32_0 = arith.constant 0 : i32
    %c0_i32_1 = arith.constant 0 : i32
    return %c0_i32, %c0_i32_0 : i32, i32
  }
  func.func @transform_40(%arg0: i32) -> (i32, i32) {
    %c0_i32 = arith.constant 0 : i32
    %c0_i32_0 = arith.constant 0 : i32
    %c0_i32_1 = arith.constant 0 : i32
    return %c0_i32, %c0_i32_0 : i32, i32
  }
  func.func @transform_41(%arg0: i32) -> (i32, i32) {
    %c0_i32 = arith.constant 0 : i32
    %c0_i32_0 = arith.constant 0 : i32
    %c0_i32_1 = arith.constant 0 : i32
    return %c0_i32, %c0_i32_0 : i32, i32
  }
  func.func @transform_42(%arg0: i32) -> (i32, i32) {
    %c0_i32 = arith.constant 0 : i32
    %c0_i32_0 = arith.constant 0 : i32
    %c0_i32_1 = arith.constant 0 : i32
    return %c0_i32, %c0_i32_0 : i32, i32
  }
  func.func @transform_43(%arg0: i32) -> (i32, i32) {
    %c0_i32 = arith.constant 0 : i32
    %c0_i32_0 = arith.constant 0 : i32
    %c0_i32_1 = arith.constant 0 : i32
    return %c0_i32, %c0_i32_0 : i32, i32
  }
  func.func @transform_44(%arg0: i32) -> (i32, i32) {
    %c0_i32 = arith.constant 0 : i32
    %c0_i32_0 = arith.constant 0 : i32
    %c0_i32_1 = arith.constant 0 : i32
    return %c0_i32, %c0_i32_0 : i32, i32
  }
}

</mosaic_0001>

<bundles_post_ra>
// kernel: tpu_custom_call.1
= control target key start
LH: loop header
LB: loop body
LE: loop exit
PB: predicated region body
PF: predicated region fallthrough
CT: control target
= control target key end

     0   :  { %s2946_s6 = smov 1   ;;  %s2947_s10 = smov 2   ;;  %s3626_s0 = inlined_call_operand.smem [shape: u32[45], index: -1, kind: input, shape index: {}] }
   0x1   :  { %s3027_s5 = sld [smem:[%s3626_s0]]   ;;  %s2948_s14 = smov 3  }
   0x2   :  { %s3032_s9 = sld [smem:[%s3626_s0 + %s2946_s6]]   ;;  %s2949_s18 = smov 4  }
   0x3   :  { %s3037_s13 = sld [smem:[%s3626_s0 + %s2947_s10]]   ;;  %s2950_s22 = smov 5  }
   0x4   :  { %s3042_s17 = sld [smem:[%s3626_s0 + %s2948_s14]]   ;;  %s2951_s26 = smov 6  }
   0x5   :  { %s3047_s21 = sld [smem:[%s3626_s0 + %s2949_s18]]   ;;  %s2952_s30 = smov 7  }
   0x6   :  { %s3052_s25 = sld [smem:[%s3626_s0 + %s2950_s22]]   ;;  %s2953_s4 = smov 8  }
   0x7   :  { %3653 = sst [smem:[#allocation51_spill]] %s3027_s5  ;;  %s2954_s10 = smov 9  }
   0x8   :  { %3654 = sst [smem:[#allocation52_spill]] %s3032_s9  ;;  %s2955_s15 = smov 10  }
   0x9   :  { %s3057_s29 = sld [smem:[%s3626_s0 + %s2951_s26]]   ;;  %s2956_s20 = smov 11  }
   0xa   :  { %s3062_s3 = sld [smem:[%s3626_s0 + %s2952_s30]]   ;;  %s2957_s26 = smov 12  }
   0xb   :  { %3655 = sst [smem:[#allocation53_spill]] %s3047_s21  ;;  %s2958_s1 = smov 13  }
   0xc   :  { %3656 = sst [smem:[#allocation54_spill]] %s3052_s25  ;;  %s2959_s7 = smov 14  }
   0xd   :  { %s3067_s8 = sld [smem:[%s3626_s0 + %s2953_s4]]   ;;  %s2961_s22 = smov 16  }
   0xe   :  { %s3072_s14 = sld [smem:[%s3626_s0 + %s2954_s10]]   ;;  %s2962_s28 = smov 17  }
   0xf   :  { %3657 = sst [smem:[#allocation55_spill]] %s3057_s29 }
  0x10   :  { %s3077_s19 = sld [smem:[%s3626_s0 + %s2955_s15]]   ;;  %s2960_s15 = smov 15  }
  0x11   :  { %s3082_s24 = sld [smem:[%s3626_s0 + %s2956_s20]]  }
  0x12   :  { %s3087_s30 = sld [smem:[%s3626_s0 + %s2957_s26]]  }
  0x13   :  { %3658 = sst [smem:[#allocation56_spill]] %s3067_s8 }
  0x14   :  { %3659 = sst [smem:[#allocation57_spill]] %s3072_s14 }
  0x15   :  { %s3092_s6 = sld [smem:[%s3626_s0 + %s2958_s1]]  }
  0x16   :  { %s3097_s12 = sld [smem:[%s3626_s0 + %s2959_s7]]   ;;  %s2963_s7 = smov 18  }
  0x17   :  { %s3102_s20 = sld [smem:[%s3626_s0 + %s2960_s15]]   ;;  %s2964_s15 = smov 19  }
  0x18   :  { %3660 = sst [smem:[#allocation58_spill]] %s3087_s30 }
  0x19   :  { %s3107_s27 = sld [smem:[%s3626_s0 + %s2961_s22]]   ;;  %s2965_s22 = smov 20  }
  0x1a   :  { %s3112_s4 = sld [smem:[%s3626_s0 + %s2962_s28]]   ;;  %s2966_s28 = smov 21  }
  0x1b   :  { %3661 = sst [smem:[#allocation59_spill]] %s3092_s6 }
  0x1c   :  { %3662 = sst [smem:[#allocation60_spill]] %s3097_s12 }
  0x1d   :  { %s3117_s12 = sld [smem:[%s3626_s0 + %s2963_s7]]   ;;  %s2967_s7 = smov 22  }
  0x1e   :  { %s3122_s6 = sld [smem:[%s3626_s0 + %s2964_s15]]   ;;  %s2968_s15 = smov 23  }
  0x1f   :  { %s3127_s29 = sld [smem:[%s3626_s0 + %s2965_s22]]   ;;  %s2969_s22 = smov 24  }
  0x20   :  { %3663 = sst [smem:[#allocation61_spill]] %s3112_s4 }
  0x21   :  { %s3132_s4 = sld [smem:[%s3626_s0 + %s2966_s28]]   ;;  %s2970_s28 = smov 25  }
  0x22   :  { %s3137_s30 = sld [smem:[%s3626_s0 + %s2967_s7]]   ;;  %s2971_s7 = smov 26  }
  0x23   :  { %s3142_s25 = sld [smem:[%s3626_s0 + %s2968_s15]]   ;;  %s2972_s15 = smov 27  }
  0x24   :  { %s3162_s8 = sld [smem:[%s3626_s0 + %s2972_s15]]   ;;  %s2976_s15 = smov 31  }
  0x25   :  { %3664 = sst [smem:[#allocation62_spill]] %s3127_s29 }
  0x26   :  { %s3147_s29 = sld [smem:[%s3626_s0 + %s2969_s22]]   ;;  %s2973_s22 = smov 28  }
  0x27   :  { %3665 = sst [smem:[#allocation63_spill]] %s3132_s4 }
  0x28   :  { %3666 = sst [smem:[#allocation64_spill]] %s3137_s30 }
  0x29   :  { %s3152_s4 = sld [smem:[%s3626_s0 + %s2970_s28]]   ;;  %s2974_s28 = smov 29  }
  0x2a   :  { %s3157_s30 = sld [smem:[%s3626_s0 + %s2971_s7]]   ;;  %s2975_s7 = smov 30  }
  0x2b   :  { %3668 = sst [smem:[#allocation66_spill]] %s3162_s8 }
  0x2c   :  { %s3167_s14 = sld [smem:[%s3626_s0 + %s2973_s22]]   ;;  %s2977_s22 = smov 32  }
  0x2d   :  { %s3177_s21 = sld [smem:[%s3626_s0 + %s2975_s7]]   ;;  %s2979_s7 = smov 34  }
  0x2e   :  { %s3182_s5 = sld [smem:[%s3626_s0 + %s2976_s15]]   ;;  %s2980_s15 = smov 35  }
  0x2f   :  { %3667 = sst [smem:[#allocation65_spill]] %s3152_s4 }
  0x30   :  { %s3172_s4 = sld [smem:[%s3626_s0 + %s2974_s28]]   ;;  %s2978_s28 = smov 33  }
  0x31   :  { %s3202_s9 = sld [smem:[%s3626_s0 + %s2980_s15]]   ;;  %s2984_s15 = smov 39  }
  0x32   :  { %3669 = sst [smem:[#allocation67_spill]] %s3167_s14 }
  0x33   :  { %3671 = sst [smem:[#allocation69_spill]] %s3177_s21 }
  0x34   :  { %s3187_s14 = sld [smem:[%s3626_s0 + %s2977_s22]]   ;;  %s2981_s22 = smov 36  }
  0x35   :  { %s3197_s21 = sld [smem:[%s3626_s0 + %s2979_s7]]   ;;  %s2983_s7 = smov 38  }
  0x36   :  { %3670 = sst [smem:[#allocation68_spill]] %s3172_s4 }
  0x37   :  { %s3192_s4 = sld [smem:[%s3626_s0 + %s2978_s28]]   ;;  %s2982_s28 = smov 37  }
  0x38   :  { %3674 = sst [smem:[#allocation72_spill]] %s3202_s9 }
  0x39   :  { %s3217_s8 = sld [smem:[%s3626_s0 + %s2983_s7]]   ;;  %s2987_s7 = smov 42  }
  0x3a   :  { %3672 = sst [smem:[#allocation70_spill]] %s3187_s14 }
  0x3b   :  { %s3207_s14 = sld [smem:[%s3626_s0 + %s2981_s22]]   ;;  %s2985_s22 = smov 40  }
  0x3c   :  { %s3222_s9 = sld [smem:[%s3626_s0 + %s2984_s15]]   ;;  %s2988_s15 = smov 43  }
  0x3d   :  { %3673 = sst [smem:[#allocation71_spill]] %s3192_s4 }
  0x3e   :  { %s3212_s4 = sld [smem:[%s3626_s0 + %s2982_s28]]   ;;  %s2986_s28 = smov 41  }
  0x3f   :  { %3677 = sst [smem:[#allocation75_spill]] %s3217_s8 }
  0x40   :  { %s3237_s8 = sld [smem:[%s3626_s0 + %s2987_s7]]  }
  0x41   :  { %3675 = sst [smem:[#allocation73_spill]] %s3207_s14 }
  0x42   :  { %3678 = sst [smem:[#allocation76_spill]] %s3222_s9 }
  0x43   :  { %s3227_s14 = sld [smem:[%s3626_s0 + %s2985_s22]]   ;;  %s2989_s22 = smov 44  }
  0x44   :  { %3676 = sst [smem:[#allocation74_spill]] %s3212_s4 }
  0x45   :  { %s3232_s4 = sld [smem:[%s3626_s0 + %s2986_s28]]  }
  0x46   :  { %s3242_s9 = sld [smem:[%s3626_s0 + %s2988_s15]]  }
  0x49   :  { %3679 = sst [smem:[#allocation77_spill]] %s3227_s14 }
  0x4a   :  { %s3247_s14 = sld [smem:[%s3626_s0 + %s2989_s22]]  }
  0x4b   :  { %95 = vsyncpa [#allocation3], 0 }
  0x4c   :  { %96 = vsyncpa [#allocation6], 0 }
  0x4d   :  { %97 = vsyncpa [#allocation9], 0 }
  0x4e   :  { %98 = vsyncpa [#allocation12], 0 }
  0x4f   :  { %99 = vsyncpa [#allocation15], 0 }
  0x50   :  { %100 = vsyncpa [#allocation18], 0 }
  0x51   :  { %101 = vsyncpa [#allocation21], 0 }
  0x52   :  { %102 = vsyncpa [#allocation24], 0 }
  0x53   :  { %103 = vsyncpa [#allocation27], 0 }
  0x54   :  { %104 = vsyncpa [#allocation30], 0 }
  0x55   :  { %105 = vsyncpa [#allocation4], 0 }
  0x56   :  { %106 = vsyncpa [#allocation33], 0  ;;  %s128_s28 = sshll.u32 %s3042_s17, 4  ;;  %s129_s28 = int_to_ptr.hbm [resolvable:$true] %s128_s28 }
  0x57   :  { %107 = vsyncpa [#allocation36], 0  ;;  %s2990_s0 = smov [#allocation5]   ;;  %s160_s2 = sshll.u32 %s3077_s19, 4  ;;  %s161_s2 = int_to_ptr.hbm [resolvable:$true] %s160_s2 }
  0x58   :  { %s130_s1 = sshll.u32 %s2990_s0, 4  ;;  %s2368_s7 = sshra.s32 %s129_s28, 4  ;;  %s131_s1 = int_to_ptr.vmem [resolvable:$true] %s130_s1  ;;  %s2369_s7 = int_to_ptr.hbm [resolvable:$true] %s2368_s7 }
  0x59   :  { %s2370_s10 = scalar_lea.hbm %s2369_s7, 2  ;;  %s2372_s11 = scalar_lea.hbm %s3042_s17, 2 }
  0x5a   :  { %p2371_p0 = scmp.ne.s32.totalorder %s2369_s7, %s2370_s10  ;;  %p2373_p1 = scmp.lt.s32.totalorder %s2369_s7, %s3042_s17 }
  0x5b   :  { %p2374_p2 = scmp.lt.s32.totalorder %s2372_s11, %s2370_s10 }
  0x5d   :  { %p2375_p3 = por %p2374_p2, %p2373_p1 }
  0x5f   :  { %p2376_p4 = pnand %p2375_p3, %p2371_p0 }
  0x61   :  { %2379 = shalt.err (!%p2376_p4)
}
  0x62   :  { %133 = dma.hbm_to_vmem [thread:$0]  %s129_s28, 32, %s131_s1, [#allocation6]  }
  0x63   :  { %s2991_s15 = smov [#allocation8]   ;;  %s188_s18 = sshll.u32 %s3102_s20, 4  ;;  %s189_s18 = int_to_ptr.hbm [resolvable:$true] %s188_s18 }
  0x64   :  { %s162_s16 = sshll.u32 %s2991_s15, 4  ;;  %s2392_s22 = sshra.s32 %s161_s2, 4  ;;  %s163_s16 = int_to_ptr.vmem [resolvable:$true] %s162_s16  ;;  %s2393_s22 = int_to_ptr.hbm [resolvable:$true] %s2392_s22 }
  0x65   :  { %s2394_s23 = scalar_lea.hbm %s2393_s22, 4  ;;  %s2396_s26 = scalar_lea.hbm %s3077_s19, 4 }
  0x66   :  { %p2395_p5 = scmp.ne.s32.totalorder %s2393_s22, %s2394_s23  ;;  %p2397_p6 = scmp.lt.s32.totalorder %s2393_s22, %s3077_s19 }
  0x67   :  { %p2398_p7 = scmp.lt.s32.totalorder %s2396_s26, %s2394_s23 }
  0x69   :  { %p2399_p8 = por %p2398_p7, %p2397_p6 }
  0x6b   :  { %p2400_p9 = pnand %p2399_p8, %p2395_p5 }
  0x6d   :  { %2403 = shalt.err (!%p2400_p9)
}
  0x6e   :  { %165 = dma.hbm_to_vmem [thread:$0]  %s161_s2, 64, %s163_s16, [#allocation9]  }
  0x6f   :  { %s214_s17 = sshll.u32 %s3117_s12, 4  ;;  %s2992_s28 = smov [#allocation11]   ;;  %s215_s17 = int_to_ptr.hbm [resolvable:$true] %s214_s17 }
  0x70   :  { %s190_s0 = sshll.u32 %s2992_s28, 4  ;;  %s2416_s1 = sshra.s32 %s189_s18, 4  ;;  %s191_s0 = int_to_ptr.vmem [resolvable:$true] %s190_s0  ;;  %s2417_s1 = int_to_ptr.hbm [resolvable:$true] %s2416_s1 }
  0x71   :  { %s2418_s7 = scalar_lea.hbm %s2417_s1, 1  ;;  %s2420_s10 = scalar_lea.hbm %s3102_s20, 1 }
  0x72   :  { %p2419_p10 = scmp.ne.s32.totalorder %s2417_s1, %s2418_s7  ;;  %p2421_p11 = scmp.lt.s32.totalorder %s2417_s1, %s3102_s20 }
  0x73   :  { %p2422_p12 = scmp.lt.s32.totalorder %s2420_s10, %s2418_s7 }
  0x75   :  { %p2423_p13 = por %p2422_p12, %p2421_p11 }
  0x77   :  { %p2424_p0 = pnand %p2423_p13, %p2419_p10 }
  0x79   :  { %2427 = shalt.err (!%p2424_p0)
}
  0x7a   :  { %193 = dma.hbm_to_vmem [thread:$0]  %s189_s18, 16, %s191_s0, [#allocation12]  }
  0x7b   :  { %s2993_s19 = smov [#allocation14]   ;;  %s242_s11 = sshll.u32 %s3142_s25, 4  ;;  %s243_s11 = int_to_ptr.hbm [resolvable:$true] %s242_s11 }
  0x7c   :  { %s216_s2 = sshll.u32 %s2993_s19, 4  ;;  %s2440_s15 = sshra.s32 %s215_s17, 4  ;;  %s217_s2 = int_to_ptr.vmem [resolvable:$true] %s216_s2  ;;  %s2441_s15 = int_to_ptr.hbm [resolvable:$true] %s2440_s15 }
  0x7d   :  { %s2442_s16 = scalar_lea.hbm %s2441_s15, 4  ;;  %s2444_s22 = scalar_lea.hbm %s3117_s12, 4 }
  0x7e   :  { %p2443_p1 = scmp.ne.s32.totalorder %s2441_s15, %s2442_s16  ;;  %p2445_p2 = scmp.lt.s32.totalorder %s2441_s15, %s3117_s12 }
  0x7f   :  { %p2446_p3 = scmp.lt.s32.totalorder %s2444_s22, %s2442_s16 }
  0x81   :  { %p2447_p4 = por %p2446_p3, %p2445_p2 }
  0x83   :  { %p2448_p5 = pnand %p2447_p4, %p2443_p1 }
  0x85   :  { %2451 = shalt.err (!%p2448_p5)
}
  0x86   :  { %219 = dma.hbm_to_vmem [thread:$0]  %s215_s17, 64, %s217_s2, [#allocation15]  }
  0x87   :  { %s268_s20 = sshll.u32 %s3157_s30, 4  ;;  %s2994_s18 = smov [#allocation17]   ;;  %s269_s20 = int_to_ptr.hbm [resolvable:$true] %s268_s20 }
  0x88   :  { %s244_s23 = sshll.u32 %s2994_s18, 4  ;;  %s2464_s26 = sshra.s32 %s243_s11, 4  ;;  %s245_s23 = int_to_ptr.vmem [resolvable:$true] %s244_s23  ;;  %s2465_s26 = int_to_ptr.hbm [resolvable:$true] %s2464_s26 }
  0x89   :  { %s2466_s28 = scalar_lea.hbm %s2465_s26, 1  ;;  %s2468_s0 = scalar_lea.hbm %s3142_s25, 1 }
  0x8a   :  { %p2467_p6 = scmp.ne.s32.totalorder %s2465_s26, %s2466_s28  ;;  %p2469_p7 = scmp.lt.s32.totalorder %s2465_s26, %s3142_s25 }
  0x8b   :  { %p2470_p8 = scmp.lt.s32.totalorder %s2468_s0, %s2466_s28 }
  0x8d   :  { %p2471_p9 = por %p2470_p8, %p2469_p7 }
  0x8f   :  { %p2472_p10 = pnand %p2471_p9, %p2467_p6 }
  0x91   :  { %2475 = shalt.err (!%p2472_p10)
}
  0x92   :  { %247 = dma.hbm_to_vmem [thread:$0]  %s243_s11, 16, %s245_s23, [#allocation18]  }
  0x93   :  { %s2995_s12 = smov [#allocation20]   ;;  %s296_s1 = sshll.u32 %s3182_s5, 4  ;;  %s297_s1 = int_to_ptr.hbm [resolvable:$true] %s296_s1 }
  0x94   :  { %s270_s17 = sshll.u32 %s2995_s12, 4  ;;  %s2488_s7 = sshra.s32 %s269_s20, 4  ;;  %s271_s17 = int_to_ptr.vmem [resolvable:$true] %s270_s17  ;;  %s2489_s7 = int_to_ptr.hbm [resolvable:$true] %s2488_s7 }
  0x95   :  { %s2490_s10 = scalar_lea.hbm %s2489_s7, 4  ;;  %s2492_s19 = scalar_lea.hbm %s3157_s30, 4 }
  0x96   :  { %p2491_p11 = scmp.ne.s32.totalorder %s2489_s7, %s2490_s10  ;;  %p2493_p12 = scmp.lt.s32.totalorder %s2489_s7, %s3157_s30 }
  0x97   :  { %p2494_p13 = scmp.lt.s32.totalorder %s2492_s19, %s2490_s10 }
  0x99   :  { %p2495_p0 = por %p2494_p13, %p2493_p12 }
  0x9b   :  { %p2496_p1 = pnand %p2495_p0, %p2491_p11 }
  0x9d   :  { %2499 = shalt.err (!%p2496_p1)
}
  0x9e   :  { %273 = dma.hbm_to_vmem [thread:$0]  %s269_s20, 64, %s271_s17, [#allocation21]  }
  0x9f   :  { %s322_s25 = sshll.u32 %s3197_s21, 4  ;;  %s2996_s2 = smov [#allocation23]   ;;  %s323_s25 = int_to_ptr.hbm [resolvable:$true] %s322_s25 }
  0xa0   :  { %s298_s11 = sshll.u32 %s2996_s2, 4  ;;  %s2512_s15 = sshra.s32 %s297_s1, 4  ;;  %s299_s11 = int_to_ptr.vmem [resolvable:$true] %s298_s11  ;;  %s2513_s15 = int_to_ptr.hbm [resolvable:$true] %s2512_s15 }
  0xa1   :  { %s2514_s16 = scalar_lea.hbm %s2513_s15, 1  ;;  %s2516_s22 = scalar_lea.hbm %s3182_s5, 1 }
  0xa2   :  { %p2515_p2 = scmp.ne.s32.totalorder %s2513_s15, %s2514_s16  ;;  %p2517_p3 = scmp.lt.s32.totalorder %s2513_s15, %s3182_s5 }
  0xa3   :  { %p2518_p4 = scmp.lt.s32.totalorder %s2516_s22, %s2514_s16 }
  0xa5   :  { %p2519_p5 = por %p2518_p4, %p2517_p3 }
  0xa7   :  { %p2520_p6 = pnand %p2519_p5, %p2515_p2 }
  0xa9   :  { %2523 = shalt.err (!%p2520_p6)
}
  0xaa   :  { %301 = dma.hbm_to_vmem [thread:$0]  %s297_s1, 16, %s299_s11, [#allocation24]  }
  0xab   :  { %s2997_s30 = smov [#allocation26]   ;;  %s117_s18 = sshll.u32 %s3037_s13, 4  ;;  %s118_s18 = int_to_ptr.hbm [resolvable:$true] %s117_s18 }
  0xac   :  { %s324_s20 = sshll.u32 %s2997_s30, 4  ;;  %s2536_s23 = sshra.s32 %s323_s25, 4  ;;  %s325_s20 = int_to_ptr.vmem [resolvable:$true] %s324_s20  ;;  %s2537_s23 = int_to_ptr.hbm [resolvable:$true] %s2536_s23 }
  0xad   :  { %s2538_s26 = scalar_lea.hbm %s2537_s23, 4  ;;  %s2540_s28 = scalar_lea.hbm %s3197_s21, 4 }
  0xae   :  { %p2539_p7 = scmp.ne.s32.totalorder %s2537_s23, %s2538_s26  ;;  %p2541_p8 = scmp.lt.s32.totalorder %s2537_s23, %s3197_s21 }
  0xaf   :  { %p2542_p9 = scmp.lt.s32.totalorder %s2540_s28, %s2538_s26 }
  0xb1   :  { %p2543_p10 = por %p2542_p9, %p2541_p8 }
  0xb3   :  { %p2544_p11 = pnand %p2543_p10, %p2539_p7 }
  0xb5   :  { %2547 = shalt.err (!%p2544_p11)
}
  0xb6   :  { %327 = dma.hbm_to_vmem [thread:$0]  %s323_s25, 64, %s325_s20, [#allocation27]  }
  0xb7   :  { %s145_s5 = sshll.u32 %s3062_s3, 4  ;;  %s2998_s0 = smov [#allocation2]   ;;  %s146_s5 = int_to_ptr.hbm [resolvable:$true] %s145_s5 }
  0xb8   :  { %s119_s12 = sshll.u32 %s2998_s0, 4  ;;  %s2560_s17 = sshra.s32 %s118_s18, 4  ;;  %s120_s12 = int_to_ptr.vmem [resolvable:$true] %s119_s12  ;;  %s2561_s17 = int_to_ptr.hbm [resolvable:$true] %s2560_s17 }
  0xb9   :  { %s2562_s1 = scalar_lea.hbm %s2561_s17, 4  ;;  %s2564_s7 = scalar_lea.hbm %s3037_s13, 4 }
  0xba   :  { %p2563_p12 = scmp.ne.s32.totalorder %s2561_s17, %s2562_s1  ;;  %p2565_p13 = scmp.lt.s32.totalorder %s2561_s17, %s3037_s13 }
  0xbb   :  { %p2566_p0 = scmp.lt.s32.totalorder %s2564_s7, %s2562_s1 }
  0xbd   :  { %p2567_p1 = por %p2566_p0, %p2565_p13 }
  0xbf   :  { %p2568_p2 = pnand %p2567_p1, %p2563_p12 }
  0xc1   :  { %2571 = shalt.err (!%p2568_p2)
}
  0xc2   :  { %122 = dma.hbm_to_vmem [thread:$0]  %s118_s18, 64, %s120_s12, [#allocation3]  }
  0xc3   :  { %s2999_s21 = smov [#allocation7]   ;;  %s171_s19 = sshll.u32 %s3082_s24, 4  ;;  %s172_s19 = int_to_ptr.hbm [resolvable:$true] %s171_s19 }
  0xc4   :  { %s147_s10 = sshll.u32 %s2999_s21, 4  ;;  %s2584_s25 = sshra.s32 %s146_s5, 4  ;;  %s148_s10 = int_to_ptr.vmem [resolvable:$true] %s147_s10  ;;  %s2585_s25 = int_to_ptr.hbm [resolvable:$true] %s2584_s25 }
  0xc5   :  { %s2586_s2 = scalar_lea.hbm %s2585_s25, 2  ;;  %s2588_s11 = scalar_lea.hbm %s3062_s3, 2 }
  0xc6   :  { %p2587_p3 = scmp.ne.s32.totalorder %s2585_s25, %s2586_s2  ;;  %p2589_p4 = scmp.lt.s32.totalorder %s2585_s25, %s3062_s3 }
  0xc7   :  { %p2590_p5 = scmp.lt.s32.totalorder %s2588_s11, %s2586_s2 }
  0xc9   :  { %p2591_p6 = por %p2590_p5, %p2589_p4 }
  0xcb   :  { %p2592_p7 = pnand %p2591_p6, %p2587_p3 }
  0xcd   :  { %2595 = shalt.err (!%p2592_p7)
}
  0xce   :  { %150 = dma.hbm_to_vmem [thread:$0]  %s146_s5, 32, %s148_s10, [#allocation6]  }
  0xcf   :  { %s198_s13 = sshll.u32 %s3107_s27, 4  ;;  %s3000_s15 = smov [#allocation10]   ;;  %s3281_s13 = int_to_ptr.hbm [resolvable:$true] %s198_s13 }
  0xd0   :  { %s173_s16 = sshll.u32 %s3000_s15, 4  ;;  %s2608_s22 = sshra.s32 %s172_s19, 4  ;;  %s174_s16 = int_to_ptr.vmem [resolvable:$true] %s173_s16  ;;  %s2609_s22 = int_to_ptr.hbm [resolvable:$true] %s2608_s22 }
  0xd1   :  { %s2610_s30 = scalar_lea.hbm %s2609_s22, 2  ;;  %s2612_s20 = scalar_lea.hbm %s3082_s24, 2 }
  0xd2   :  { %p2611_p8 = scmp.ne.s32.totalorder %s2609_s22, %s2610_s30  ;;  %p2613_p9 = scmp.lt.s32.totalorder %s2609_s22, %s3082_s24 }
  0xd3   :  { %p2614_p10 = scmp.lt.s32.totalorder %s2612_s20, %s2610_s30 }
  0xd5   :  { %p2615_p11 = por %p2614_p10, %p2613_p9 }
  0xd7   :  { %p2616_p12 = pnand %p2615_p11, %p2611_p8 }
  0xd9   :  { %2619 = shalt.err (!%p2616_p12)
}
  0xda   :  { %176 = dma.hbm_to_vmem [thread:$0]  %s172_s19, 32, %s174_s16, [#allocation9]  }
  0xdb   :  { %s3001_s3 = smov [#allocation13]   ;;  %s2632_s23 = sshra.s32 %s3281_s13, 4  ;;  %s2633_s23 = int_to_ptr.hbm [resolvable:$true] %s2632_s23 }
  0xdc   :  { %s200_s18 = sshll.u32 %s3001_s3, 4  ;;  %s2634_s26 = scalar_lea.hbm %s2633_s23, 8  ;;  %s201_s18 = int_to_ptr.vmem [resolvable:$true] %s200_s18 }
  0xdd   :  { %p2635_p13 = scmp.ne.s32.totalorder %s2633_s23, %s2634_s26  ;;  %s2636_s28 = scalar_lea.hbm %s3107_s27, 8 }
  0xde   :  { %p2637_p0 = scmp.lt.s32.totalorder %s2633_s23, %s3107_s27  ;;  %p2638_p1 = scmp.lt.s32.totalorder %s2636_s28, %s2634_s26 }
  0xe0   :  { %p2639_p2 = por %p2638_p1, %p2637_p0 }
  0xe2   :  { %p2640_p3 = pnand %p2639_p2, %p2635_p13 }
  0xe4   :  { %2643 = shalt.err (!%p2640_p3)
}
  0xe5   :  { %s3002_s24 = smov 64   ;;  %s3003_s5 = smov 4  }
  0xe6   :  { %206 = dma.hbm_to_vmem [thread:$0]  %s3281_s13, 128, %s201_s18, [#allocation12], %s3002_s24, %s3002_s24, %s3003_s5  }
  0xe7   :  { %s225_s0 = sshll.u32 %s3122_s6, 4  ;;  %s3004_s12 = smov [#allocation16]   ;;  %s226_s0 = int_to_ptr.hbm [resolvable:$true] %s225_s0 }
  0xe8   :  { %s227_s17 = sshll.u32 %s3004_s12, 4  ;;  %s252_s27 = sshll.u32 %s3147_s29, 4  ;;  %s228_s17 = int_to_ptr.vmem [resolvable:$true] %s227_s17  ;;  %s253_s27 = int_to_ptr.hbm [resolvable:$true] %s252_s27 }
  0xe9   :  { %s2656_s1 = sshra.s32 %s226_s0, 4  ;;  %s2660_s21 = scalar_lea.hbm %s3122_s6, 2  ;;  %s2657_s1 = int_to_ptr.hbm [resolvable:$true] %s2656_s1 }
  0xea   :  { %s2658_s7 = scalar_lea.hbm %s2657_s1, 2  ;;  %p2661_p5 = scmp.lt.s32.totalorder %s2657_s1, %s3122_s6 }
  0xeb   :  { %p2659_p4 = scmp.ne.s32.totalorder %s2657_s1, %s2658_s7  ;;  %p2662_p6 = scmp.lt.s32.totalorder %s2660_s21, %s2658_s7 }
  0xed   :  { %p2663_p7 = por %p2662_p6, %p2661_p5 }
  0xef   :  { %p2664_p8 = pnand %p2663_p7, %p2659_p4 }
  0xf1   :  { %2667 = shalt.err (!%p2664_p8)
}
  0xf2   :  { %230 = dma.hbm_to_vmem [thread:$0]  %s226_s0, 32, %s228_s17, [#allocation15]  }
  0xf3   :  { %s3680_s10 = sld [smem:[#allocation66_spill]]  ;;  %s3005_s19 = smov [#allocation19]  }
  0xf4   :  { %s254_s25 = sshll.u32 %s3005_s19, 4  ;;  %s2680_s11 = sshra.s32 %s253_s27, 4  ;;  %s255_s25 = int_to_ptr.vmem [resolvable:$true] %s254_s25  ;;  %s2681_s11 = int_to_ptr.hbm [resolvable:$true] %s2680_s11 }
  0xf5   :  { %s2682_s13 = scalar_lea.hbm %s2681_s11, 8  ;;  %s2684_s15 = scalar_lea.hbm %s3147_s29, 8 }
  0xf6   :  { %p2683_p9 = scmp.ne.s32.totalorder %s2681_s11, %s2682_s13  ;;  %p2685_p10 = scmp.lt.s32.totalorder %s2681_s11, %s3147_s29 }
  0xf7   :  { %p2686_p11 = scmp.lt.s32.totalorder %s2684_s15, %s2682_s13 }
  0xf9   :  { %s279_s2 = sshll.u32 %s3680_s10, 4  ;;  %p2687_p12 = por %p2686_p11, %p2685_p10  ;;  %s280_s2 = int_to_ptr.hbm [resolvable:$true] %s279_s2 }
  0xfb   :  { %p2688_p13 = pnand %p2687_p12, %p2683_p9 }
  0xfd   :  { %2691 = shalt.err (!%p2688_p13)
}
  0xfe   :  { %s3681_s6 = sld [smem:[#allocation70_spill]]  ;;  %s3006_s22 = smov [#allocation22]  }
  0xff   :  { %260 = dma.hbm_to_vmem [thread:$0]  %s253_s27, 128, %s255_s25, [#allocation18], %s3002_s24, %s3002_s24, %s3003_s5  }
 0x100   :  { %s281_s30 = sshll.u32 %s3006_s22, 4  ;;  %s2704_s20 = sshra.s32 %s280_s2, 4  ;;  %s282_s30 = int_to_ptr.vmem [resolvable:$true] %s281_s30  ;;  %s2705_s20 = int_to_ptr.hbm [resolvable:$true] %s2704_s20 }
 0x101   :  { %s2706_s29 = scalar_lea.hbm %s2705_s20, 2  ;;  %s2708_s3 = scalar_lea.hbm %s3680_s10, 2 }
 0x102   :  { %p2707_p0 = scmp.ne.s32.totalorder %s2705_s20, %s2706_s29  ;;  %p2709_p1 = scmp.lt.s32.totalorder %s2705_s20, %s3680_s10 }
 0x103   :  { %p2710_p2 = scmp.lt.s32.totalorder %s2708_s3, %s2706_s29 }
 0x104   :  { %s306_s16 = sshll.u32 %s3681_s6, 4  ;;  %s3303_s16 = int_to_ptr.hbm [resolvable:$true] %s306_s16 }
 0x105   :  { %p2711_p3 = por %p2710_p2, %p2709_p1 }
 0x107   :  { %p2712_p4 = pnand %p2711_p3, %p2707_p0 }
 0x109   :  { %2715 = shalt.err (!%p2712_p4)
}
 0x10a   :  { %284 = dma.hbm_to_vmem [thread:$0]  %s280_s2, 32, %s282_s30, [#allocation21]  }
 0x10b   :  { %s3682_s18 = sld [smem:[#allocation72_spill]]  ;;  %s3007_s23 = smov [#allocation25]  }
 0x10c   :  { %s308_s26 = sshll.u32 %s3007_s23, 4  ;;  %s2728_s0 = sshra.s32 %s3303_s16, 4  ;;  %s309_s26 = int_to_ptr.vmem [resolvable:$true] %s308_s26  ;;  %s2729_s0 = int_to_ptr.hbm [resolvable:$true] %s2728_s0 }
 0x10d   :  { %s2730_s12 = scalar_lea.hbm %s2729_s0, 8  ;;  %s2732_s17 = scalar_lea.hbm %s3681_s6, 8 }
 0x10e   :  { %p2731_p5 = scmp.ne.s32.totalorder %s2729_s0, %s2730_s12  ;;  %p2733_p6 = scmp.lt.s32.totalorder %s2729_s0, %s3681_s6 }
 0x10f   :  { %p2734_p7 = scmp.lt.s32.totalorder %s2732_s17, %s2730_s12 }
 0x111   :  { %s333_s28 = sshll.u32 %s3682_s18, 4  ;;  %p2735_p8 = por %p2734_p7, %p2733_p6  ;;  %s334_s28 = int_to_ptr.hbm [resolvable:$true] %s333_s28 }
 0x113   :  { %p2736_p9 = pnand %p2735_p8, %p2731_p5 }
 0x115   :  { %2739 = shalt.err (!%p2736_p9)
}
 0x116   :  { %s3683_s27 = sld [smem:[#allocation74_spill]]  ;;  %s3008_s7 = smov [#allocation28]  }
 0x117   :  { %314 = dma.hbm_to_vmem [thread:$0]  %s3303_s16, 128, %s309_s26, [#allocation24], %s3002_s24, %s3002_s24, %s3003_s5  }
 0x118   :  { %s335_s21 = sshll.u32 %s3008_s7, 4  ;;  %s2752_s10 = sshra.s32 %s334_s28, 4  ;;  %s336_s21 = int_to_ptr.vmem [resolvable:$true] %s335_s21  ;;  %s2753_s10 = int_to_ptr.hbm [resolvable:$true] %s2752_s10 }
 0x119   :  { %s2754_s19 = scalar_lea.hbm %s2753_s10, 2  ;;  %s2756_s25 = scalar_lea.hbm %s3682_s18, 2 }
 0x11a   :  { %p2755_p10 = scmp.ne.s32.totalorder %s2753_s10, %s2754_s19  ;;  %p2757_p11 = scmp.lt.s32.totalorder %s2753_s10, %s3682_s18 }
 0x11b   :  { %p2758_p12 = scmp.lt.s32.totalorder %s2756_s25, %s2754_s19 }
 0x11c   :  { %s345_s1 = sshll.u32 %s3683_s27, 4  ;;  %s3316_s1 = int_to_ptr.hbm [resolvable:$true] %s345_s1 }
 0x11d   :  { %p2759_p13 = por %p2758_p12, %p2757_p11 }
 0x11f   :  { %p2760_p0 = pnand %p2759_p13, %p2755_p10 }
 0x121   :  { %2763 = shalt.err (!%p2760_p0)
}
 0x122   :  { %338 = dma.hbm_to_vmem [thread:$0]  %s334_s28, 32, %s336_s21, [#allocation27]  }
 0x123   :  { %s3009_s24 = smov [#allocation29]   ;;  %s2776_s2 = sshra.s32 %s3316_s1, 4  ;;  %s2777_s2 = int_to_ptr.hbm [resolvable:$true] %s2776_s2 }
 0x124   :  { %s347_s5 = sshll.u32 %s3009_s24, 4  ;;  %s2778_s11 = scalar_lea.hbm %s2777_s2, 16  ;;  %s348_s5 = int_to_ptr.vmem [resolvable:$true] %s347_s5 }
 0x125   :  { %p2779_p1 = scmp.ne.s32.totalorder %s2777_s2, %s2778_s11  ;;  %s2780_s13 = scalar_lea.hbm %s3683_s27, 16 }
 0x126   :  { %p2781_p2 = scmp.lt.s32.totalorder %s2777_s2, %s3683_s27  ;;  %p2782_p3 = scmp.lt.s32.totalorder %s2780_s13, %s2778_s11 }
 0x128   :  { %p2783_p4 = por %p2782_p3, %p2781_p2 }
 0x12a   :  { %p2784_p5 = pnand %p2783_p4, %p2779_p1 }
 0x12c   :  { %2787 = shalt.err (!%p2784_p5)
}
 0x12d   :  { %s3010_s15 = smov 128   ;;  %s3011_s6 = smov 8  }
 0x12e   :  { %353 = dma.hbm_to_vmem [thread:$0]  %s3316_s1, 256, %s348_s5, [#allocation30], %s3010_s15, %s3010_s15, %s3011_s6  }
 0x12f   :  { %2920 = dma.done.wait [#allocation3], 64  }
 0x130   :  { %2921 = vsyncadd [#allocation3], 4294967232 }
 0x131   :  { %2922 = dma.done.wait [#allocation6], 64  }
 0x132   :  { %2923 = vsyncadd [#allocation6], 4294967232 }
 0x133   :  { %2924 = dma.done.wait [#allocation9], 96  }
 0x134   :  { %2925 = vsyncadd [#allocation9], 4294967200 }
 0x135   :  { %2926 = dma.done.wait [#allocation12], 144  }
 0x136   :  { %2927 = vsyncadd [#allocation12], 4294967152 }
 0x137   :  { %2928 = dma.done.wait [#allocation15], 96  }
 0x138   :  { %2929 = vsyncadd [#allocation15], 4294967200 }
 0x139   :  { %2930 = dma.done.wait [#allocation18], 144  }
 0x13a   :  { %2931 = vsyncadd [#allocation18], 4294967152 }
 0x13b   :  { %2932 = dma.done.wait [#allocation21], 96  }
 0x13c   :  { %2933 = vsyncadd [#allocation21], 4294967200 }
 0x13d   :  { %2934 = dma.done.wait [#allocation24], 144  }
 0x13e   :  { %2935 = vsyncadd [#allocation24], 4294967152 }
 0x13f   :  { %2936 = dma.done.wait [#allocation27], 96  }
 0x140   :  { %2937 = vsyncadd [#allocation27], 4294967200 }
 0x141   :  { %2938 = dma.done.wait [#allocation30], 256  }
 0x142   :  { %2939 = vsyncadd [#allocation30], 4294967040  ;;  %s3684_s16 = sld [smem:[#allocation52_spill]]  ;;  %vm477_vm0 = vcmask 261120   ;;  %v3337_v13 = vld [vmem:[#allocation2] sm:$0x7] }
 0x143   :  { %s3685_s22 = sld [smem:[#allocation51_spill]]  ;;  %v444_v14 = vperm.slane %v3337_v13, 0  ;;  %v519_v33 = vld [vmem:[#allocation5] sm:$0x3]  ;;  %vm524_vm1 = vcmask 523264   ;;  %vm638_vm2 = vcmask 130048  }
 0x144   :  { %s3686_s30 = sld [smem:[#allocation53_spill]]  ;;  %v3395_v47 = vld [vmem:[#allocation8] sm:$0x7]  ;;  %v903_v57 = vld [vmem:[#allocation10] sm:$0x3]  ;;  %s3012_s5 = smov [#allocation32]  }
 0x145   :  { %s3687_s20 = sld [smem:[#allocation57_spill]]  ;;  %v855_v48 = vperm.slane %v3395_v47, 0  ;;  %s1949_s2 = sshll.u32 %s3012_s5, 4  ;;  %s1950_s2 = int_to_ptr.vmem [resolvable:$true] %s1949_s2 }
 0x146   :  { %s3688_s29 = sld [smem:[#allocation56_spill]]  ;;  %s1951_s11 = sshll.u32 %s3232_s4, 4  ;;  %s1952_s11 = int_to_ptr.hbm [resolvable:$true] %s1951_s11 }
 0x147   :  { %s3689_s3 = sld [smem:[#allocation54_spill]]  ;;  %s2812_s13 = sshra.s32 %s1952_s11, 4  ;;  %s2813_s13 = int_to_ptr.hbm [resolvable:$true] %s2812_s13 }
 0x148   :  { %v2255_v0 = vld [vmem:[%s3684_s16 + $0x8] sm:$0xff]  ;;  %v2254_v1 = vld [vmem:[%s3684_s16] sm:$0xff]  ;;  %s3690_s18 = sld [smem:[#allocation58_spill]]  ;;  %s2814_s16 = scalar_lea.hbm %s2813_s13, 32 }
 0x149   :  { %496 = vmatpush.bf16.msra.mxu0 %v2255_v0  ;;  %v2250_v2 = vld [vmem:[%s3685_s22] sm:$0xff]  ;;  %v2251_v3 = vld [vmem:[%s3685_s22 + $0x8] sm:$0xff]  ;;  %v2252_v4 = vld [vmem:[%s3685_s22 + $0x10] sm:$0xff]  ;;  %s3691_s23 = sld [smem:[#allocation55_spill]]  ;;  %p2815_p6 = scmp.ne.s32.totalorder %s2813_s13, %s2814_s16 }
 0x14a   :  { %v2253_v5 = vld [vmem:[%s3685_s22 + $0x18] sm:$0xff]  ;;  %v522_v31 = vld [vmem:[%s3686_s30 + $0x10] sm:$0xff]  ;;  %v521_v34 = vld [vmem:[%s3686_s30 + $0x8] sm:$0xff]  ;;  %s3692_s26 = sld [smem:[#allocation59_spill]]  ;;  %s2816_s22 = scalar_lea.hbm %s3232_s4, 32 }
 0x14b   :  { %v523_v28 = vld [vmem:[%s3686_s30 + $0x18] sm:$0xff]  ;;  %v2263_v36 = vld [vmem:[%s3687_s20 + $0x8] sm:$0xff]  ;;  %v2262_v37 = vld [vmem:[%s3687_s20] sm:$0xff]  ;;  %s3693_s28 = sld [smem:[#allocation61_spill]]  ;;  %p2817_p7 = scmp.lt.s32.totalorder %s2813_s13, %s3232_s4 }
 0x14c   :  { %591 = vmatpush.msra.mxu3 %v523_v28  ;;  %v2260_v38 = vld [vmem:[%s3688_s29] sm:$0xff]  ;;  %v2261_v39 = vld [vmem:[%s3688_s29 + $0x8] sm:$0xff]  ;;  %s3694_s0 = sld [smem:[#allocation60_spill]]  ;;  %p2818_p8 = scmp.lt.s32.totalorder %s2816_s22, %s2814_s16 }
 0x14d   :  { %497 = vmatpush.bf16.msra.mxu0 %v2254_v1  ;;  %v520_v40 = vld [vmem:[%s3686_s30] sm:$0xff]  ;;  %v637_v44 = vld [vmem:[%s3689_s3 + $0x8] sm:$0xff]  ;;  %s3695_s12 = sld [smem:[#allocation62_spill]] }
 0x14e   :  { %592 = vmatpush.msra.mxu3 %v522_v31  ;;  %v636_v59 = vld [vmem:[%s3689_s3] sm:$0xff]  ;;  %v907_v61 = vld [vmem:[%s3690_s18 + $0x18] sm:$0xff]  ;;  %v906_v62 = vld [vmem:[%s3690_s18 + $0x10] sm:$0xff]  ;;  %s3696_s17 = sld [smem:[#allocation63_spill]]  ;;  %p2819_p9 = por %p2818_p8, %p2817_p7 }
 0x14f   :  { %v905_v63 = vld [vmem:[%s3690_s18 + $0x8] sm:$0xff]  ;;  %s3697_s27 = sld [smem:[#allocation65_spill]] }
 0x150   :  { %2098 = vmatmul.msk.bf16.vlgmr.msra.gmra.mxu0 %vm477_vm0, %v2250_v2  ;;  %593 = vmatpush.msra.mxu3 %v521_v34  ;;  %s3698_s1 = sld [smem:[#allocation64_spill]]  ;;  %p2820_p10 = pnand %p2819_p9, %p2815_p6 }
 0x151   :  { %s3699_s7 = sld [smem:[#allocation67_spill]] }
 0x152   :  { %594 = vmatpush.msra.mxu3 %v520_v40  ;;  %s3700_s21 = sld [smem:[#allocation71_spill]] }
 0x153   :  { %s3701_s10 = sld [smem:[#allocation68_spill]] }
 0x154   :  { %614 = vmatpush.msrb.mxu3 %v523_v28  ;;  %s3702_s19 = sld [smem:[#allocation73_spill]] }
 0x155   :  { %s3703_s25 = sld [smem:[#allocation69_spill]] }
 0x156   :  { %615 = vmatpush.msrb.mxu3 %v522_v31  ;;  %v2257_v31 = vld [vmem:[%s3691_s23 + $0x4] sm:$0xf0]  ;;  %s3704_s24 = sld [smem:[#allocation75_spill]] }
 0x158   :  { %616 = vmatpush.msrb.mxu3 %v521_v34  ;;  %v2112_v34 = vld [vmem:[%s3691_s23 + $0x8] sm:$0xf0] }
 0x15a   :  { %617 = vmatpush.msrb.mxu3 %v520_v40 }
 0x160   :  { %2099 = vmatmul.msk.bf16.gmra.mxu0 %vm477_vm0, %v2251_v3 }
 0x170   :  { %2100 = vmatmul.msk.bf16.gmra.mxu0 %vm477_vm0, %v2252_v4 }
 0x180   :  { %2101 = vmatmul.msk.bf16.gmra.mxu0 %vm477_vm0, %v2253_v5  ;;  %v904_v5 = vld [vmem:[%s3690_s18] sm:$0xff] }
 0x1cd   :  { %v499_v6 = vpop.f32.mrf.mxu0 }
 0x1ce   :  { %v3370_v29 = vadd.f32 %v499_v6, %v444_v14 }
 0x1d0   :  { %v548_v35 = vmul.f32 %v3370_v29, %v3370_v29 }
 0x1d5   :  { %v501_v7 = vpop.f32.mrf.mxu0 }
 0x1d6   :  { %v3364_v26 = vadd.f32 %v501_v7, %v444_v14 }
 0x1d8   :  { %v549_v32 = vmul.f32 %v3364_v26, %v3364_v26 }
 0x1dd   :  { %v504_v8 = vpop.f32.mrf.mxu0 }
 0x1de   :  { %v3359_v24 = vadd.f32 %v504_v8, %v444_v14 }
 0x1e0   :  { %v550_v30 = vmul.f32 %v3359_v24, %v3359_v24 }
 0x1e5   :  { %v506_v9 = vpop.f32.mrf.mxu0 }
 0x1e6   :  { %v3354_v22 = vadd.f32 %v506_v9, %v444_v14 }
 0x1e8   :  { %v551_v27 = vmul.f32 %v3354_v22, %v3354_v22 }
 0x1ed   :  { %v509_v10 = vpop.f32.mrf.mxu0 }
 0x1ee   :  { %v3349_v20 = vadd.f32 %v509_v10, %v444_v14 }
 0x1f0   :  { %v552_v25 = vmul.f32 %v3349_v20, %v3349_v20 }
 0x1f5   :  { %v511_v11 = vpop.f32.mrf.mxu0 }
 0x1f6   :  { %v3344_v18 = vadd.f32 %v511_v11, %v444_v14 }
 0x1f8   :  { %v553_v23 = vmul.f32 %v3344_v18, %v3344_v18 }
 0x1fd   :  { %v514_v12 = vpop.f32.mrf.mxu0 }
 0x1fe   :  { %v3340_v16 = vadd.f32 %v514_v12, %v444_v14 }
 0x200   :  { %v554_v21 = vmul.f32 %v3340_v16, %v3340_v16 }
 0x205   :  { %v516_v15 = vpop.f32.mrf.mxu0 }
 0x206   :  { %v3342_v17 = vadd.f32 %v516_v15, %v444_v14 }
 0x208   :  { %536 = vmatpush.msra.mxu1 %v3342_v17  ;;  %v555_v19 = vmul.f32 %v3342_v17, %v3342_v17 }
 0x20a   :  { %537 = vmatpush.msra.mxu1 %v3340_v16  ;;  %564 = vmatpush.msra.mxu2 %v555_v19  ;;  %v2118_v19 = vld [vmem:[%s3691_s23 + $0x10] sm:$0xf] }
 0x20c   :  { %538 = vmatpush.msra.mxu1 %v3344_v18  ;;  %565 = vmatpush.msra.mxu2 %v554_v21  ;;  %v2259_v21 = vld [vmem:[%s3691_s23 + $0x14] sm:$0xf0] }
 0x20e   :  { %539 = vmatpush.msra.mxu1 %v3349_v20  ;;  %566 = vmatpush.msra.mxu2 %v553_v23  ;;  %v2258_v23 = vld [vmem:[%s3691_s23 + $0x14] sm:$0xf] }
 0x210   :  { %540 = vmatpush.msra.mxu1 %v3354_v22  ;;  %567 = vmatpush.msra.mxu2 %v552_v25  ;;  %v2119_v25 = vor.u32 %v2259_v21, %v2118_v19 }
 0x212   :  { %541 = vmatpush.msra.mxu1 %v3359_v24  ;;  %568 = vmatpush.msra.mxu2 %v551_v27  ;;  %v2120_v27 = vld [vmem:[%s3691_s23 + $0x18] sm:$0xf0] }
 0x213   :  { %v2123_v28 = vor.u32 %v2258_v23, %v2120_v27 }
 0x214   :  { %542 = vmatpush.msra.mxu1 %v3364_v26  ;;  %569 = vmatpush.msra.mxu2 %v550_v30  ;;  %v2110_v30 = vld [vmem:[%s3691_s23] sm:$0xf] }
 0x216   :  { %543 = vmatpush.msra.mxu1 %v3370_v29  ;;  %570 = vmatpush.msra.mxu2 %v549_v32  ;;  %v2256_v32 = vld [vmem:[%s3691_s23 + $0x4] sm:$0xf] }
 0x217   :  { %2102 = vmatmul.msk.f32.vlgmr.msra.gmra.mxu1 %vm524_vm1, %v519_v33 }
 0x218   :  { %571 = vmatpush.msra.mxu2 %v548_v35  ;;  %656 = vmatpush.msrb.mxu1 %v637_v44  ;;  %v2115_v35 = vor.u32 %v2256_v32, %v2112_v34 }
 0x219   :  { %2103 = vmatmul.msk.f32.vlgmr.msra.gmra.mxu2 %vm524_vm1, %v519_v33  ;;  %v2111_v33 = vor.u32 %v2257_v31, %v2110_v30 }
 0x21a   :  { %890 = vmatpush.bf16.msrb.mxu2 %v2263_v36  ;;  %657 = vmatpush.msrb.mxu1 %v636_v59  ;;  %v685_v36 = vperm.slane %v3337_v13, 1 }
 0x21c   :  { %807 = vmatpush.bf16.msra.mxu1 %v2123_v28 }
 0x21e   :  { %891 = vmatpush.bf16.msrb.mxu2 %v2262_v37 }
 0x220   :  { %808 = vmatpush.bf16.msra.mxu1 %v2115_v35 }
 0x221   :  { %2148 = vmatmul.msk.bf16.vlgmr.msrb.gmra.mxu2 %vm477_vm0, %v2260_v38 }
 0x231   :  { %2149 = vmatmul.msk.bf16.gmra.mxu2 %vm477_vm0, %v2261_v39  ;;  %v688_v39 = vperm.slane %v3337_v13, 2 }
 0x294   :  { %v545_v41 = vpop.f32.mrf.mxu1 }
 0x295   :  { %2104 = vmatmul.msk.f32.vlgmr.msra.gmra.mxu3 %vm477_vm0, %v545_v41 }
 0x296   :  { %679 = vmatpush.msra.mxu3 %v637_v44  ;;  %v1016_v44 = vld [vmem:[%s3692_s26 + $0x8] sm:$0xff] }
 0x298   :  { %680 = vmatpush.msra.mxu3 %v636_v59 }
 0x29c   :  { %v573_v42 = vpop.f32.mrf.mxu2 }
 0x29d   :  { %2105 = vmatmul.msk.f32.vlgmr.msrb.gmra.mxu3 %vm477_vm0, %v573_v42 }
 0x29e   :  { %778 = vmatpush.bf16.msrb.mxu3 %v2119_v25 }
 0x2a2   :  { %779 = vmatpush.bf16.msrb.mxu3 %v2111_v33 }
 0x2a4   :  { %v893_v43 = vpop.f32.mrf.mxu2 }
 0x2a5   :  { %v3409_v55 = vadd.f32 %v893_v43, %v855_v48 }
 0x2a7   :  { %v931_v58 = vmul.f32 %v3409_v55, %v3409_v55 }
 0x2ac   :  { %v895_v45 = vpop.f32.mrf.mxu2 }
 0x2ad   :  { %v3402_v52 = vadd.f32 %v895_v45, %v855_v48 }
 0x2af   :  { %v932_v56 = vmul.f32 %v3402_v52, %v3402_v52 }
 0x2b4   :  { %v898_v46 = vpop.f32.mrf.mxu2 }
 0x2b5   :  { %v3398_v50 = vadd.f32 %v898_v46, %v855_v48 }
 0x2b7   :  { %v933_v54 = vmul.f32 %v3398_v50, %v3398_v50 }
 0x2bc   :  { %v900_v49 = vpop.f32.mrf.mxu2 }
 0x2bd   :  { %v3400_v51 = vadd.f32 %v900_v49, %v855_v48  ;;  %v1015_v49 = vld [vmem:[%s3692_s26] sm:$0xff] }
 0x2bf   :  { %923 = vmatpush.msra.mxu2 %v3400_v51  ;;  %v934_v53 = vmul.f32 %v3400_v51, %v3400_v51 }
 0x2c1   :  { %924 = vmatpush.msra.mxu2 %v3398_v50  ;;  %947 = vmatpush.msrb.mxu0 %v934_v53 }
 0x2c3   :  { %925 = vmatpush.msra.mxu2 %v3402_v52  ;;  %948 = vmatpush.msrb.mxu0 %v933_v54 }
 0x2c5   :  { %926 = vmatpush.msra.mxu2 %v3409_v55  ;;  %949 = vmatpush.msrb.mxu0 %v932_v56 }
 0x2c6   :  { %2150 = vmatmul.msk.f32.vlgmr.msra.gmra.mxu2 %vm477_vm0, %v903_v57 }
 0x2c7   :  { %950 = vmatpush.msrb.mxu0 %v931_v58  ;;  %970 = vmatpush.msrb.mxu2 %v907_v61 }
 0x2c8   :  { %2151 = vmatmul.msk.f32.vlgmr.msrb.gmra.mxu0 %vm477_vm0, %v903_v57  ;;  %v2268_v57 = vld [vmem:[%s3693_s28 + $0x8] sm:$0xff] }
 0x2c9   :  { %993 = vmatpush.msra.mxu0 %v907_v61  ;;  %971 = vmatpush.msrb.mxu2 %v906_v62 }
 0x2cb   :  { %994 = vmatpush.msra.mxu0 %v906_v62  ;;  %972 = vmatpush.msrb.mxu2 %v905_v63 }
 0x2cd   :  { %995 = vmatpush.msra.mxu0 %v905_v63  ;;  %973 = vmatpush.msrb.mxu2 %v904_v5 }
 0x2cf   :  { %996 = vmatpush.msra.mxu0 %v904_v5  ;;  %1034 = vmatpush.msra.mxu2 %v1016_v44 }
 0x2d1   :  { %1057 = vmatpush.msrb.mxu0 %v1016_v44  ;;  %1035 = vmatpush.msra.mxu2 %v1015_v49 }
 0x2d3   :  { %1058 = vmatpush.msrb.mxu0 %v1015_v49 }
 0x318   :  { %v596_v60 = vpop.f32.mrf.mxu3 }
 0x319   :  { %2106 = vmatmul.msk.f32.vlgmr.msrb.gmra.mxu1 %vm638_vm2, %v596_v60  ;;  %v622_v0 = vmul.f32 %v596_v60, %v596_v60 }
 0x320   :  { %v619_v1 = vpop.f32.mrf.mxu3 }
 0x321   :  { %v623_v2 = vsub.f32 %v619_v1, %v622_v0 }
 0x323   :  { %v624_v3 = vmax.f32 %v623_v2, 0.0 }
 0x325   :  { %v625_v4 = vadd.f32 1e-05, %v624_v3 }
 0x327   :  { %2358 = vrsqrt.f32 %v625_v4  ;;  %vm632_vm4 = vweird.f32 %v625_v4 }
 0x32d   :  { %v2359_v6 = vpop.eup %2358 }
 0x32e   :  { %v627_v7 = vmul.f32 %v2359_v6, %v625_v4  ;;  %vm633_vm3 = vweird.f32 %v2359_v6 }
 0x32f   :  { %vm634_vm5 = vmor %vm632_vm4, %vm633_vm3 }
 0x330   :  { %v628_v8 = vmul.f32 %v2359_v6, %v627_v7 }
 0x332   :  { %v629_v9 = vmul.f32 0.5, %v628_v8 }
 0x334   :  { %v630_v10 = vsub.f32 1.5, %v629_v9 }
 0x336   :  { %v631_v11 = vmul.f32 %v2359_v6, %v630_v10 }
 0x338   :  { %v635_v12 = vsel %vm634_vm5, %v2359_v6, %v631_v11 }
 0x339   :  { %2107 = vmatmul.msk.f32.vlgmr.msra.gmra.mxu3 %vm638_vm2, %v635_v12 }
 0x33a   :  { %1177 = vmatpush.bf16.msra.mxu3 %v2268_v57 }
 0x345   :  { %v952_v14 = vpop.f32.mrf.mxu0 }
 0x346   :  { %2153 = vmatmul.msk.f32.vlgmr.msra.gmra.mxu0 %vm477_vm0, %v952_v14 }
 0x349   :  { %v928_v15 = vpop.f32.mrf.mxu2 }
 0x34a   :  { %2152 = vmatmul.msk.f32.vlgmr.msrb.gmra.mxu2 %vm477_vm0, %v928_v15 }
 0x396   :  { %v659_v40 = vpop.f32.mrf.mxu1 }
 0x3bc   :  { %v682_v37 = vpop.f32.mrf.mxu3 }
 0x3bd   :  { %v686_v38 = vmul.f32 %v685_v36, %v682_v37  ;;  %v2266_v37 = vld [vmem:[#allocation13] sm:$0xff] }
 0x3bf   :  { %v687_v41 = vmul.f32 %v686_v38, %v659_v40  ;;  %v692_v42 = vperm.slane %v686_v38, 0  ;;  %v691_v5 = vrot.slane %v686_v38, 1  ;;  %v734_v38 = vld [vmem:[#allocation7] sm:$0x3] }
 0x3c0   :  { %v3465_v40 = vperm.slane %v734_v38, 0 }
 0x3c1   :  { %v689_v43 = vsub.f32 %v688_v39, %v687_v41  ;;  %v696_v45 = vmul.f32 %v692_v42, %v3370_v29  ;;  %v697_v46 = vmul.f32 %v692_v42, %v3364_v26  ;;  %v698_v26 = vmul.f32 %v692_v42, %v3359_v24  ;;  %v2267_v24 = vld [vmem:[%s3693_s28] sm:$0xff]  ;;  %v2265_v41 = vld [vmem:[%s3694_s0 + $0x8] sm:$0xff] }
 0x3c2   :  { %v699_v61 = vmul.f32 %v692_v42, %v3354_v22  ;;  %v693_v8 = vperm.slane %v691_v5, 0  ;;  %1178 = vmatpush.bf16.msra.mxu3 %v2267_v24  ;;  %v3462_v39 = vperm.slane %v734_v38, 1  ;;  %1126 = vmatpush.bf16.msrb.mxu2 %v2265_v41 }
 0x3c3   :  { %v706_v48 = vperm.slane %v689_v43, 0  ;;  %v998_v60 = vpop.f32.mrf.mxu0  ;;  %v705_v6 = vrot.slane %v689_v43, 1 }
 0x3c4   :  { %v700_v11 = vmul.f32 %v693_v8, %v3349_v20  ;;  %v701_v14 = vmul.f32 %v693_v8, %v3344_v18  ;;  %v702_v18 = vmul.f32 %v693_v8, %v3340_v16  ;;  %v703_v20 = vmul.f32 %v693_v8, %v3342_v17 }
 0x3c5   :  { %v710_v53 = vadd.f32 %v706_v48, %v696_v45  ;;  %v711_v54 = vadd.f32 %v706_v48, %v697_v46  ;;  %v712_v63 = vadd.f32 %v706_v48, %v698_v26  ;;  %v713_v0 = vadd.f32 %v706_v48, %v699_v61  ;;  %v2264_v45 = vld [vmem:[%s3694_s0] sm:$0xff] }
 0x3c6   :  { %v707_v10 = vperm.slane %v705_v6, 0  ;;  %1127 = vmatpush.bf16.msrb.mxu2 %v2264_v45  ;;  %v1189_v45 = vld [vmem:[%s3695_s12 + $0x18] sm:$0xff] }
 0x3c7   :  { %v718_v56 = vmax.f32 %v710_v53, 0.0  ;;  %v719_v13 = vmax.f32 %v711_v54, 0.0  ;;  %v720_v3 = vmax.f32 %v712_v63, 0.0  ;;  %v721_v4 = vmax.f32 %v713_v0, 0.0 }
 0x3c8   :  { %v714_v15 = vadd.f32 %v707_v10, %v700_v11  ;;  %v715_v21 = vadd.f32 %v707_v10, %v701_v14  ;;  %v716_v32 = vadd.f32 %v707_v10, %v702_v18  ;;  %v717_v33 = vadd.f32 %v707_v10, %v703_v20 }
 0x3c9   :  { %v726_v58 = vpack.c.bf16 %v719_v13, %v718_v56  ;;  %v727_v7 = vpack.c.bf16 %v721_v4, %v720_v3 }
 0x3ca   :  { %v722_v27 = vmax.f32 %v714_v15, 0.0  ;;  %v723_v28 = vmax.f32 %v715_v21, 0.0  ;;  %v724_v34 = vmax.f32 %v716_v32, 0.0  ;;  %v725_v35 = vmax.f32 %v717_v33, 0.0 }
 0x3cb   :  { %2124 = vmatmul.msk.bf16.vlgmr.msrb.gmra.mxu3 %vm477_vm0, %v726_v58  ;;  %2128 = vmatmul.msk.bf16.vlgmr.msra.gmra.mxu1 %vm477_vm0, %v726_v58 }
 0x3cc   :  { %v728_v31 = vpack.c.bf16 %v723_v28, %v722_v27  ;;  %v729_v36 = vpack.c.bf16 %v725_v35, %v724_v34 }
 0x3cd   :  { %v975_v59 = vpop.f32.mrf.mxu2 }
 0x3ce   :  { %v1001_v29 = vmul.f32 %v975_v59, %v975_v59  ;;  %2154 = vmatmul.msk.f32.vlgmr.msra.gmra.mxu2 %vm638_vm2, %v975_v59  ;;  %v1063_v59 = vperm.slane %v3395_v47, 1 }
 0x3d0   :  { %v1002_v62 = vsub.f32 %v998_v60, %v1001_v29 }
 0x3d2   :  { %v1003_v1 = vmax.f32 %v1002_v62, 0.0  ;;  %v1066_v62 = vperm.slane %v3395_v47, 2 }
 0x3d4   :  { %v1004_v2 = vadd.f32 1e-05, %v1003_v1 }
 0x3d6   :  { %2360 = vrsqrt.f32 %v1004_v2  ;;  %vm1011_vm6 = vweird.f32 %v1004_v2 }
 0x3db   :  { %2125 = vmatmul.msk.bf16.gmra.mxu3 %vm477_vm0, %v727_v7  ;;  %2129 = vmatmul.msk.bf16.gmra.mxu1 %vm477_vm0, %v727_v7 }
 0x3dc   :  { %v2361_v9 = vpop.eup %2360 }
 0x3dd   :  { %v1006_v22 = vmul.f32 %v2361_v9, %v1004_v2  ;;  %vm1012_vm7 = vweird.f32 %v2361_v9 }
 0x3de   :  { %vm1013_vm8 = vmor %vm1011_vm6, %vm1012_vm7 }
 0x3df   :  { %v1007_v12 = vmul.f32 %v2361_v9, %v1006_v22 }
 0x3e1   :  { %v1008_v19 = vmul.f32 0.5, %v1007_v12 }
 0x3e3   :  { %v1009_v23 = vsub.f32 1.5, %v1008_v19 }
 0x3e5   :  { %v1010_v25 = vmul.f32 %v2361_v9, %v1009_v23 }
 0x3e7   :  { %v1014_v30 = vsel %vm1013_vm8, %v2361_v9, %v1010_v25 }
 0x3e8   :  { %2155 = vmatmul.msk.f32.vlgmr.msrb.gmra.mxu0 %vm638_vm2, %v1014_v30 }
 0x3eb   :  { %2126 = vmatmul.msk.bf16.gmra.mxu3 %vm477_vm0, %v728_v31  ;;  %2130 = vmatmul.msk.bf16.gmra.mxu1 %vm477_vm0, %v728_v31 }
 0x3fb   :  { %2127 = vmatmul.msk.bf16.gmra.mxu3 %vm477_vm0, %v729_v36  ;;  %2131 = vmatmul.msk.bf16.gmra.mxu1 %vm477_vm0, %v729_v36 }
 0x40b   :  { %2178 = vmatmul.msk.bf16.vlgmr.msra.gmra.mxu3 %vm477_vm0, %v2266_v37 }
 0x448   :  { %v810_v16 = vpop.f32.mrf.mxu1 }
 0x449   :  { %v811_v17 = vadd.f32 %v810_v16, %v3462_v39  ;;  %v3492_v16 = vld [vmem:[#allocation14] sm:$0x7] }
 0x44b   :  { %831 = vst [vmem:[#allocation31 + $0x8] sm:$0xff] %v811_v17  ;;  %v1150_v17 = vperm.slane %v3492_v16, 0 }
 0x44e   :  { %v781_v42 = vpop.f32.mrf.mxu3 }
 0x44f   :  { %v782_v43 = vadd.f32 %v781_v42, %v3465_v40 }
 0x450   :  { %v812_v44 = vpop.f32.mrf.mxu1 }
 0x451   :  { %830 = vst [vmem:[#allocation31] sm:$0xff] %v782_v43  ;;  %v813_v46 = vadd.f32 %v812_v44, %v3462_v39  ;;  %v1037_v29 = vpop.f32.mrf.mxu2 }
 0x453   :  { %833 = vst [vmem:[#allocation31 + $0x18] sm:$0xff] %v813_v46  ;;  %v1188_v46 = vld [vmem:[%s3695_s12 + $0x10] sm:$0xff] }
 0x456   :  { %v783_v48 = vpop.f32.mrf.mxu3 }
 0x457   :  { %v784_v49 = vadd.f32 %v783_v48, %v3465_v40  ;;  %v2354_v48 = vld [vmem:[#allocation11] ss:$0 sm:$0xff] }
 0x458   :  { %v815_v53 = vpop.f32.mrf.mxu1 }
 0x459   :  { %832 = vst [vmem:[#allocation31 + $0x10] sm:$0xff] %v784_v49  ;;  %v816_v54 = vadd.f32 %v815_v53, %v3462_v39  ;;  %v1187_v49 = vld [vmem:[%s3695_s12 + $0x8] sm:$0xff] }
 0x45b   :  { %835 = vst [vmem:[#allocation31 + $0x28] sm:$0xff] %v816_v54 }
 0x45e   :  { %v786_v56 = vpop.f32.mrf.mxu3 }
 0x45f   :  { %v787_v13 = vadd.f32 %v786_v56, %v3465_v40  ;;  %v1186_v56 = vld [vmem:[%s3695_s12] sm:$0xff] }
 0x460   :  { %v817_v57 = vpop.f32.mrf.mxu1 }
 0x461   :  { %834 = vst [vmem:[#allocation31 + $0x20] sm:$0xff] %v787_v13  ;;  %v818_v58 = vadd.f32 %v817_v57, %v3462_v39  ;;  %v1296_v13 = vld [vmem:[%s3696_s17 + $0x8] sm:$0xff] }
 0x462   :  { %1314 = vmatpush.msrb.mxu3 %v1296_v13 }
 0x463   :  { %837 = vst [vmem:[#allocation31 + $0x38] sm:$0xff] %v818_v58 }
 0x465   :  { %v1060_v60 = vpop.f32.mrf.mxu0 }
 0x466   :  { %v1064_v26 = vmul.f32 %v1063_v59, %v1060_v60  ;;  %v788_v61 = vpop.f32.mrf.mxu3 }
 0x467   :  { %v789_v63 = vadd.f32 %v788_v61, %v3465_v40 }
 0x468   :  { %v1070_v0 = vperm.slane %v1064_v26, 0  ;;  %v1065_v1 = vmul.f32 %v1064_v26, %v1037_v29  ;;  %v820_v2 = vpop.f32.mrf.mxu1  ;;  %v1069_v10 = vrot.slane %v1064_v26, 1 }
 0x469   :  { %836 = vst [vmem:[#allocation31 + $0x30] sm:$0xff] %v789_v63  ;;  %v821_v3 = vadd.f32 %v820_v2, %v3462_v39  ;;  %v1295_v63 = vld [vmem:[%s3696_s17] sm:$0xff] }
 0x46a   :  { %v1067_v4 = vsub.f32 %v1066_v62, %v1065_v1  ;;  %v1074_v5 = vmul.f32 %v1070_v0, %v3409_v55  ;;  %v1075_v6 = vmul.f32 %v1070_v0, %v3402_v52  ;;  %v1071_v21 = vperm.slane %v1069_v10, 0  ;;  %1315 = vmatpush.msrb.mxu3 %v1295_v63  ;;  %v2273_v0 = vld [vmem:[%s3697_s27 + $0x8] sm:$0xff]  ;;  %v2272_v1 = vld [vmem:[%s3697_s27] sm:$0xff] }
 0x46b   :  { %839 = vst [vmem:[#allocation31 + $0x48] sm:$0xff] %v821_v3 }
 0x46c   :  { %v1080_v7 = vperm.slane %v1067_v4, 0  ;;  %v1079_v15 = vrot.slane %v1067_v4, 1  ;;  %v1076_v25 = vmul.f32 %v1071_v21, %v3398_v50  ;;  %v1077_v27 = vmul.f32 %v1071_v21, %v3400_v51  ;;  %1440 = vmatpush.bf16.msra.mxu3 %v2273_v0  ;;  %v1452_v21 = vld [vmem:[%s3699_s7 + $0x18] sm:$0xff] }
 0x46e   :  { %v1084_v8 = vadd.f32 %v1080_v7, %v1074_v5  ;;  %v1085_v24 = vadd.f32 %v1080_v7, %v1075_v6  ;;  %v791_v9 = vpop.f32.mrf.mxu3  ;;  %v1081_v52 = vperm.slane %v1079_v15, 0  ;;  %v2271_v7 = vld [vmem:[#allocation19] sm:$0xff] }
 0x46f   :  { %v792_v47 = vadd.f32 %v791_v9, %v3465_v40 }
 0x470   :  { %v1088_v22 = vmax.f32 %v1084_v8, 0.0  ;;  %v1089_v11 = vmax.f32 %v1085_v24, 0.0  ;;  %v822_v12 = vpop.f32.mrf.mxu1  ;;  %v1086_v31 = vadd.f32 %v1081_v52, %v1076_v25  ;;  %v1087_v18 = vadd.f32 %v1081_v52, %v1077_v27  ;;  %1441 = vmatpush.bf16.msra.mxu3 %v2272_v1  ;;  %v1451_v52 = vld [vmem:[%s3699_s7 + $0x10] sm:$0xff]  ;;  %v3525_v25 = vld [vmem:[#allocation20] sm:$0x7] }
 0x471   :  { %838 = vst [vmem:[#allocation31 + $0x40] sm:$0xff] %v792_v47  ;;  %v823_v14 = vadd.f32 %v822_v12, %v3462_v39  ;;  %v1413_v27 = vperm.slane %v3525_v25, 0 }
 0x472   :  { %v1092_v19 = vpack.c.bf16 %v1089_v11, %v1088_v22  ;;  %v1090_v32 = vmax.f32 %v1086_v31, 0.0  ;;  %v1091_v33 = vmax.f32 %v1087_v18, 0.0  ;;  %v1343_v18 = vperm.slane %v3492_v16, 1 }
 0x473   :  { %841 = vst [vmem:[#allocation31 + $0x58] sm:$0xff] %v823_v14  ;;  %v2270_v14 = vld [vmem:[%s3698_s1 + $0x8] sm:$0xff] }
 0x474   :  { %2164 = vmatmul.msk.bf16.vlgmr.msrb.gmra.mxu2 %vm477_vm0, %v1092_v19  ;;  %v1093_v37 = vpack.c.bf16 %v1091_v33, %v1090_v32  ;;  %v2269_v19 = vld [vmem:[%s3698_s1] sm:$0xff]  ;;  %v1346_v33 = vperm.slane %v3492_v16, 2 }
 0x476   :  { %v793_v55 = vpop.f32.mrf.mxu3 }
 0x477   :  { %v794_v23 = vadd.f32 %v793_v55, %v3465_v40 }
 0x478   :  { %v825_v28 = vpop.f32.mrf.mxu1 }
 0x479   :  { %840 = vst [vmem:[#allocation31 + $0x50] sm:$0xff] %v794_v23  ;;  %v826_v30 = vadd.f32 %v825_v28, %v3462_v39  ;;  %v1450_v23 = vld [vmem:[%s3699_s7 + $0x8] sm:$0xff] }
 0x47b   :  { %843 = vst [vmem:[#allocation31 + $0x68] sm:$0xff] %v826_v30 }
 0x47e   :  { %v796_v20 = vpop.f32.mrf.mxu3 }
 0x47f   :  { %v797_v34 = vadd.f32 %v796_v20, %v3465_v40 }
 0x480   :  { %v827_v35 = vpop.f32.mrf.mxu1 }
 0x481   :  { %842 = vst [vmem:[#allocation31 + $0x60] sm:$0xff] %v797_v34  ;;  %v828_v36 = vadd.f32 %v827_v35, %v3462_v39 }
 0x483   :  { %845 = vst [vmem:[#allocation31 + $0x78] sm:$0xff] %v828_v36  ;;  %v1448_v36 = vld [vmem:[#allocation22] sm:$0x3] }
 0x484   :  { %2165 = vmatmul.msk.bf16.gmra.mxu2 %vm477_vm0, %v1093_v37 }
 0x486   :  { %v798_v50 = vpop.f32.mrf.mxu3 }
 0x487   :  { %v799_v51 = vadd.f32 %v798_v50, %v3465_v40  ;;  %v1185_v40 = vld [vmem:[#allocation16] sm:$0x3] }
 0x489   :  { %844 = vst [vmem:[#allocation31 + $0x70] sm:$0xff] %v799_v51 }
 0x48e   :  { %v1180_v38 = vpop.f32.mrf.mxu3 }
 0x48f   :  { %v3495_v42 = vadd.f32 %v1180_v38, %v1150_v17 }
 0x491   :  { %v1213_v44 = vmul.f32 %v3495_v42, %v3495_v42 }
 0x496   :  { %v1182_v41 = vpop.f32.mrf.mxu3 }
 0x497   :  { %v3497_v39 = vadd.f32 %v1182_v41, %v1150_v17 }
 0x499   :  { %v1214_v43 = vmul.f32 %v3497_v39, %v3497_v39  ;;  %1207 = vmatpush.msra.mxu0 %v3497_v39 }
 0x49b   :  { %1208 = vmatpush.msra.mxu0 %v3495_v42  ;;  %1229 = vmatpush.msrb.mxu1 %v1214_v43 }
 0x49c   :  { %2179 = vmatmul.msk.f32.vlgmr.msra.gmra.mxu0 %vm638_vm2, %v1185_v40 }
 0x49d   :  { %1230 = vmatpush.msrb.mxu1 %v1213_v44  ;;  %1250 = vmatpush.msrb.mxu0 %v1189_v45 }
 0x49e   :  { %2180 = vmatmul.msk.f32.vlgmr.msrb.gmra.mxu1 %vm638_vm2, %v1185_v40 }
 0x49f   :  { %1273 = vmatpush.msra.mxu1 %v1189_v45  ;;  %1251 = vmatpush.msrb.mxu0 %v1188_v46 }
 0x4a1   :  { %1274 = vmatpush.msra.mxu1 %v1188_v46  ;;  %1252 = vmatpush.msrb.mxu0 %v1187_v49 }
 0x4a3   :  { %1275 = vmatpush.msra.mxu1 %v1187_v49  ;;  %1253 = vmatpush.msrb.mxu0 %v1186_v56 }
 0x4a5   :  { %1276 = vmatpush.msra.mxu1 %v1186_v56  ;;  %1337 = vmatpush.msra.mxu0 %v1296_v13  ;;  %v2278_v56 = vld [vmem:[%s3700_s21 + $0x8] sm:$0xff] }
 0x4a7   :  { %1338 = vmatpush.msra.mxu0 %v1295_v63  ;;  %1396 = vmatpush.bf16.msrb.mxu1 %v2270_v14  ;;  %v1711_v14 = vld [vmem:[#allocation28] sm:$0x3] }
 0x4ab   :  { %1397 = vmatpush.bf16.msrb.mxu1 %v2269_v19 }
 0x4f7   :  { %v1129_v53 = vpop.f32.mrf.mxu2 }
 0x4f8   :  { %v1130_v54 = vadd.f32 %v2354_v48, %v1129_v53 }
 0x4fa   :  { %1139 = vst [vmem:[#allocation32] sm:$0xff] %v1130_v54  ;;  %v1449_v54 = vld [vmem:[%s3699_s7] sm:$0xff] }
 0x4ff   :  { %v1131_v57 = vpop.f32.mrf.mxu2 }
 0x500   :  { %v1132_v58 = vadd.f32 %v2354_v48, %v1131_v57  ;;  %v2355_v57 = vld [vmem:[#allocation17] ss:$0 sm:$0xff] }
 0x502   :  { %1140 = vst [vmem:[#allocation32 + $0x8] sm:$0xff] %v1132_v58  ;;  %v2276_v58 = vld [vmem:[#allocation25] sm:$0xff] }
 0x507   :  { %v1134_v59 = vpop.f32.mrf.mxu2 }
 0x508   :  { %v1135_v60 = vadd.f32 %v2354_v48, %v1134_v59 }
 0x50a   :  { %1141 = vst [vmem:[#allocation32 + $0x10] sm:$0xff] %v1135_v60 }
 0x50f   :  { %v1136_v29 = vpop.f32.mrf.mxu2 }
 0x510   :  { %v1137_v26 = vadd.f32 %v2354_v48, %v1136_v29 }
 0x512   :  { %1142 = vst [vmem:[#allocation32 + $0x18] sm:$0xff] %v1137_v26 }
 0x519   :  { %v1210_v61 = vpop.f32.mrf.mxu0 }
 0x51a   :  { %2181 = vmatmul.msk.f32.vlgmr.msrb.gmra.mxu0 %vm477_vm0, %v1210_v61  ;;  %v1559_v61 = vld [vmem:[%s3701_s10 + $0x8] sm:$0xff] }
 0x51b   :  { %v1232_v62 = vpop.f32.mrf.mxu1 }
 0x51c   :  { %2182 = vmatmul.msk.f32.vlgmr.msra.gmra.mxu1 %vm477_vm0, %v1232_v62  ;;  %v1558_v62 = vld [vmem:[%s3701_s10] sm:$0xff] }
 0x51d   :  { %1536 = vmatpush.msra.mxu1 %v1452_v21 }
 0x51f   :  { %1537 = vmatpush.msra.mxu1 %v1451_v52 }
 0x521   :  { %1538 = vmatpush.msra.mxu1 %v1450_v23 }
 0x523   :  { %1539 = vmatpush.msra.mxu1 %v1449_v54 }
 0x597   :  { %v1255_v2 = vpop.f32.mrf.mxu0 }
 0x598   :  { %v1281_v3 = vmul.f32 %v1255_v2, %v1255_v2  ;;  %2183 = vmatmul.msk.f32.vlgmr.msrb.gmra.mxu3 %vm638_vm2, %v1255_v2 }
 0x599   :  { %v1278_v4 = vpop.f32.mrf.mxu1  ;;  %1600 = vmatpush.msrb.mxu3 %v1559_v61 }
 0x59a   :  { %v1282_v5 = vsub.f32 %v1278_v4, %v1281_v3 }
 0x59b   :  { %1601 = vmatpush.msrb.mxu3 %v1558_v62 }
 0x59c   :  { %v1283_v6 = vmax.f32 %v1282_v5, 0.0  ;;  %v3556_v5 = vld [vmem:[#allocation26] sm:$0x7] }
 0x59e   :  { %v1284_v8 = vadd.f32 1e-05, %v1283_v6 }
 0x5a0   :  { %2362 = vrsqrt.f32 %v1284_v8  ;;  %2206 = vmatmul.msk.bf16.vlgmr.msra.gmra.mxu3 %vm477_vm0, %v2271_v7  ;;  %vm1291_vm10 = vweird.f32 %v1284_v8  ;;  %v1676_v7 = vperm.slane %v3556_v5, 0 }
 0x5a6   :  { %v2363_v24 = vpop.eup %2362 }
 0x5a7   :  { %v1286_v9 = vmul.f32 %v2363_v24, %v1284_v8  ;;  %vm1292_vm9 = vweird.f32 %v2363_v24 }
 0x5a8   :  { %vm1293_vm11 = vmor %vm1291_vm10, %vm1292_vm9 }
 0x5a9   :  { %v1287_v47 = vmul.f32 %v2363_v24, %v1286_v9 }
 0x5ab   :  { %v1288_v10 = vmul.f32 0.5, %v1287_v47 }
 0x5ad   :  { %v1289_v22 = vsub.f32 1.5, %v1288_v10 }
 0x5af   :  { %v1290_v11 = vmul.f32 %v2363_v24, %v1289_v22 }
 0x5b1   :  { %v1294_v12 = vsel %vm1293_vm11, %v2363_v24, %v1290_v11 }
 0x5b2   :  { %2184 = vmatmul.msk.f32.vlgmr.msra.gmra.mxu0 %vm638_vm2, %v1294_v12 }
 0x61b   :  { %v1317_v15 = vpop.f32.mrf.mxu3 }
 0x623   :  { %v1443_v55 = vpop.f32.mrf.mxu3 }
 0x624   :  { %v3528_v30 = vadd.f32 %v1443_v55, %v1413_v27  ;;  %v1715_v55 = vld [vmem:[%s3702_s19 + $0x18] sm:$0xff] }
 0x626   :  { %v1476_v35 = vmul.f32 %v3528_v30, %v3528_v30 }
 0x62b   :  { %v1445_v28 = vpop.f32.mrf.mxu3 }
 0x62c   :  { %v3530_v31 = vadd.f32 %v1445_v28, %v1413_v27  ;;  %v1713_v27 = vld [vmem:[%s3702_s19 + $0x8] sm:$0xff]  ;;  %v1712_v28 = vld [vmem:[%s3702_s19] sm:$0xff] }
 0x62e   :  { %v1477_v20 = vmul.f32 %v3530_v31, %v3530_v31  ;;  %1470 = vmatpush.msrb.mxu0 %v3530_v31 }
 0x62f   :  { %v1340_v32 = vpop.f32.mrf.mxu0 }
 0x630   :  { %v1344_v34 = vmul.f32 %v1343_v18, %v1340_v32  ;;  %1471 = vmatpush.msrb.mxu0 %v3528_v30  ;;  %1492 = vmatpush.msra.mxu2 %v1477_v20  ;;  %v2275_v18 = vld [vmem:[%s3703_s25 + $0x8] sm:$0xff]  ;;  %v2274_v20 = vld [vmem:[%s3703_s25] sm:$0xff] }
 0x631   :  { %2207 = vmatmul.msk.f32.vlgmr.msrb.gmra.mxu0 %vm638_vm2, %v1448_v36 }
 0x632   :  { %v1345_v37 = vmul.f32 %v1344_v34, %v1317_v15  ;;  %v1349_v50 = vrot.slane %v1344_v34, 1  ;;  %v1350_v51 = vperm.slane %v1344_v34, 0  ;;  %1493 = vmatpush.msra.mxu2 %v1476_v35  ;;  %1513 = vmatpush.msra.mxu0 %v1452_v21 }
 0x633   :  { %2208 = vmatmul.msk.f32.vlgmr.msra.gmra.mxu2 %vm638_vm2, %v1448_v36  ;;  %v1609_v36 = vperm.slane %v3525_v25, 2 }
 0x634   :  { %v1347_v38 = vsub.f32 %v1346_v33, %v1345_v37  ;;  %v1351_v16 = vperm.slane %v1349_v50, 0  ;;  %1514 = vmatpush.msra.mxu0 %v1451_v52  ;;  %v1354_v17 = vmul.f32 %v1350_v51, %v3495_v42  ;;  %v2277_v42 = vld [vmem:[%s3700_s21] sm:$0xff]  ;;  %1577 = vmatpush.msrb.mxu2 %v1559_v61  ;;  %v1606_v33 = vperm.slane %v3525_v25, 1 }
 0x636   :  { %v1357_v41 = vrot.slane %v1347_v38, 1  ;;  %v1358_v43 = vperm.slane %v1347_v38, 0  ;;  %1515 = vmatpush.msra.mxu0 %v1450_v23  ;;  %v1355_v40 = vmul.f32 %v1351_v16, %v3497_v39  ;;  %1578 = vmatpush.msrb.mxu2 %v1558_v62  ;;  %v1714_v23 = vld [vmem:[%s3702_s19 + $0x10] sm:$0xff] }
 0x638   :  { %v1359_v44 = vperm.slane %v1357_v41, 0  ;;  %v1362_v45 = vadd.f32 %v1358_v43, %v1354_v17  ;;  %1516 = vmatpush.msra.mxu0 %v1449_v54 }
 0x63a   :  { %v1363_v46 = vadd.f32 %v1359_v44, %v1355_v40  ;;  %v1364_v48 = vmax.f32 %v1362_v45, 0.0  ;;  %1659 = vmatpush.bf16.msrb.mxu0 %v2275_v18 }
 0x63c   :  { %v1365_v49 = vmax.f32 %v1363_v46, 0.0 }
 0x63e   :  { %v1366_v53 = vpack.c.bf16 %v1365_v49, %v1364_v48  ;;  %1660 = vmatpush.bf16.msrb.mxu0 %v2274_v20 }
 0x640   :  { %2193 = vmatmul.msk.bf16.vlgmr.msrb.gmra.mxu1 %vm477_vm0, %v1366_v53 }
 0x641   :  { %1703 = vmatpush.bf16.msrb.mxu1 %v2278_v56  ;;  %v1822_v56 = vld [vmem:[#allocation29 + $0x8] sm:$0xff] }
 0x645   :  { %1704 = vmatpush.bf16.msrb.mxu1 %v2277_v42  ;;  %v1821_v42 = vld [vmem:[#allocation29] sm:$0xff] }
 0x6ae   :  { %v1473_v13 = vpop.f32.mrf.mxu0 }
 0x6af   :  { %2209 = vmatmul.msk.f32.vlgmr.msra.gmra.mxu0 %vm477_vm0, %v1473_v13  ;;  %v2356_v13 = vld [vmem:[#allocation23] ss:$0 sm:$0xff] }
 0x6b0   :  { %1840 = vmatpush.msra.mxu0 %v1822_v56 }
 0x6b2   :  { %1841 = vmatpush.msra.mxu0 %v1821_v42 }
 0x6b6   :  { %v1495_v39 = vpop.f32.mrf.mxu2 }
 0x6b7   :  { %2210 = vmatmul.msk.f32.vlgmr.msra.gmra.mxu1 %vm477_vm0, %v1495_v39 }
 0x6b8   :  { %1863 = vmatpush.msra.mxu1 %v1822_v56 }
 0x6ba   :  { %1864 = vmatpush.msra.mxu1 %v1821_v42 }
 0x6bd   :  { %v1399_v59 = vpop.f32.mrf.mxu1 }
 0x6be   :  { %v1400_v60 = vadd.f32 %v2355_v57, %v1399_v59 }
 0x6bf   :  { %2234 = vmatmul.msk.bf16.vlgmr.msrb.gmra.mxu1 %vm477_vm0, %v2276_v58 }
 0x6c0   :  { %1404 = vst.msk [vmem:[#allocation34] sm:$0xff] %vm524_vm1, %v1400_v60 }
 0x6c5   :  { %v1401_v29 = vpop.f32.mrf.mxu1 }
 0x6c6   :  { %v1402_v26 = vadd.f32 %v2355_v57, %v1401_v29 }
 0x6c8   :  { %1405 = vst.msk [vmem:[#allocation34 + $0x8] sm:$0xff] %vm524_vm1, %v1402_v26 }
 0x72c   :  { %v1518_v63 = vpop.f32.mrf.mxu0 }
 0x72d   :  { %2211 = vmatmul.msk.f32.vlgmr.msrb.gmra.mxu2 %vm638_vm2, %v1518_v63  ;;  %v1544_v0 = vmul.f32 %v1518_v63, %v1518_v63 }
 0x734   :  { %v1541_v1 = vpop.f32.mrf.mxu1 }
 0x735   :  { %v1545_v2 = vsub.f32 %v1541_v1, %v1544_v0 }
 0x737   :  { %v1546_v3 = vmax.f32 %v1545_v2, 0.0 }
 0x739   :  { %v1547_v4 = vadd.f32 1e-05, %v1546_v3 }
 0x73b   :  { %2364 = vrsqrt.f32 %v1547_v4  ;;  %vm1554_vm13 = vweird.f32 %v1547_v4 }
 0x73c   :  { %v1706_v6 = vpop.f32.mrf.mxu1 }
 0x73d   :  { %v3559_v9 = vadd.f32 %v1706_v6, %v1676_v7  ;;  %v2280_v6 = vld [vmem:[%s3704_s24 + $0x8] sm:$0xff] }
 0x73f   :  { %v1739_v15 = vmul.f32 %v3559_v9, %v3559_v9 }
 0x741   :  { %v2365_v8 = vpop.eup %2364 }
 0x742   :  { %v1549_v24 = vmul.f32 %v2365_v8, %v1547_v4  ;;  %vm1555_vm12 = vweird.f32 %v2365_v8 }
 0x743   :  { %vm1556_vm14 = vmor %vm1554_vm13, %vm1555_vm12 }
 0x744   :  { %v1550_v47 = vmul.f32 %v2365_v8, %v1549_v24  ;;  %v1708_v10 = vpop.f32.mrf.mxu1 }
 0x745   :  { %v3561_v22 = vadd.f32 %v1708_v10, %v1676_v7  ;;  %v2279_v7 = vld [vmem:[%s3704_s24] sm:$0xff]  ;;  %v1872_v10 = vperm.slane %v3556_v5, 2 }
 0x746   :  { %v1551_v11 = vmul.f32 0.5, %v1550_v47 }
 0x747   :  { %v1740_v12 = vmul.f32 %v3561_v22, %v3561_v22  ;;  %1733 = vmatpush.msra.mxu2 %v3561_v22 }
 0x748   :  { %v1552_v19 = vsub.f32 1.5, %v1551_v11 }
 0x749   :  { %1734 = vmatpush.msra.mxu2 %v3559_v9  ;;  %1755 = vmatpush.msra.mxu3 %v1740_v12 }
 0x74a   :  { %v1553_v21 = vmul.f32 %v2365_v8, %v1552_v19  ;;  %2235 = vmatmul.msk.f32.vlgmr.msra.gmra.mxu2 %vm638_vm2, %v1711_v14 }
 0x74b   :  { %1756 = vmatpush.msra.mxu3 %v1739_v15  ;;  %1776 = vmatpush.msrb.mxu2 %v1715_v55 }
 0x74c   :  { %v1557_v52 = vsel %vm1556_vm14, %v2365_v8, %v1553_v21  ;;  %v1869_v8 = vperm.slane %v3556_v5, 1 }
 0x74d   :  { %2212 = vmatmul.msk.f32.vlgmr.msrb.gmra.mxu3 %vm638_vm2, %v1557_v52  ;;  %1777 = vmatpush.msrb.mxu2 %v1714_v23 }
 0x74e   :  { %1799 = vmatpush.msrb.mxu3 %v1715_v55 }
 0x74f   :  { %1778 = vmatpush.msrb.mxu2 %v1713_v27 }
 0x750   :  { %1800 = vmatpush.msrb.mxu3 %v1714_v23 }
 0x751   :  { %1779 = vmatpush.msrb.mxu2 %v1712_v28 }
 0x752   :  { %1801 = vmatpush.msrb.mxu3 %v1713_v27 }
 0x753   :  { %1922 = vmatpush.bf16.msra.mxu2 %v2280_v6 }
 0x754   :  { %1802 = vmatpush.msrb.mxu3 %v1712_v28 }
 0x755   :  { %2236 = vmatmul.msk.f32.vlgmr.msra.gmra.mxu3 %vm638_vm2, %v1711_v14 }
 0x757   :  { %1923 = vmatpush.bf16.msra.mxu2 %v2279_v7 }
 0x7b0   :  { %v1580_v32 = vpop.f32.mrf.mxu2 }
 0x7cd   :  { %v1736_v34 = vpop.f32.mrf.mxu2 }
 0x7ce   :  { %2237 = vmatmul.msk.f32.vlgmr.msrb.gmra.mxu2 %vm477_vm0, %v1736_v34 }
 0x7d0   :  { %v1603_v35 = vpop.f32.mrf.mxu3 }
 0x7d1   :  { %v1607_v37 = vmul.f32 %v1606_v33, %v1603_v35 }
 0x7d3   :  { %v1608_v50 = vmul.f32 %v1607_v37, %v1580_v32  ;;  %v1612_v51 = vrot.slane %v1607_v37, 1  ;;  %v1613_v38 = vperm.slane %v1607_v37, 0 }
 0x7d5   :  { %v1610_v16 = vsub.f32 %v1609_v36, %v1608_v50  ;;  %v1614_v17 = vperm.slane %v1612_v51, 0  ;;  %v1617_v41 = vmul.f32 %v1613_v38, %v3528_v30 }
 0x7d7   :  { %v1620_v43 = vrot.slane %v1610_v16, 1  ;;  %v1621_v40 = vperm.slane %v1610_v16, 0  ;;  %v1618_v45 = vmul.f32 %v1614_v17, %v3530_v31 }
 0x7d8   :  { %v1758_v44 = vpop.f32.mrf.mxu3 }
 0x7d9   :  { %v1622_v46 = vperm.slane %v1620_v43, 0  ;;  %v1625_v48 = vadd.f32 %v1621_v40, %v1617_v41  ;;  %2238 = vmatmul.msk.f32.vlgmr.msrb.gmra.mxu3 %vm477_vm0, %v1758_v44 }
 0x7db   :  { %v1626_v49 = vadd.f32 %v1622_v46, %v1618_v45  ;;  %v1627_v53 = vmax.f32 %v1625_v48, 0.0 }
 0x7dd   :  { %v1628_v25 = vmax.f32 %v1626_v49, 0.0 }
 0x7df   :  { %v1629_v54 = vpack.c.bf16 %v1628_v25, %v1627_v53 }
 0x7e1   :  { %2221 = vmatmul.msk.bf16.vlgmr.msrb.gmra.mxu0 %vm477_vm0, %v1629_v54 }
 0x851   :  { %v1781_v30 = vpop.f32.mrf.mxu2 }
 0x852   :  { %2239 = vmatmul.msk.f32.vlgmr.msra.gmra.mxu0 %vm638_vm2, %v1781_v30  ;;  %v1807_v31 = vmul.f32 %v1781_v30, %v1781_v30 }
 0x85c   :  { %v1804_v39 = vpop.f32.mrf.mxu3 }
 0x85d   :  { %v1808_v57 = vsub.f32 %v1804_v39, %v1807_v31 }
 0x85e   :  { %v1662_v58 = vpop.f32.mrf.mxu0 }
 0x85f   :  { %v1809_v59 = vmax.f32 %v1808_v57, 0.0  ;;  %v1663_v60 = vadd.f32 %v2356_v13, %v1662_v58 }
 0x861   :  { %v1810_v29 = vadd.f32 1e-05, %v1809_v59  ;;  %1667 = vst.msk [vmem:[#allocation35] sm:$0xff] %vm477_vm0, %v1663_v60 }
 0x863   :  { %2366 = vrsqrt.f32 %v1810_v29  ;;  %vm1817_vm1 = vweird.f32 %v1810_v29 }
 0x866   :  { %v1664_v26 = vpop.f32.mrf.mxu0 }
 0x867   :  { %v1665_v61 = vadd.f32 %v2356_v13, %v1664_v26 }
 0x869   :  { %v2367_v62 = vpop.eup %2366  ;;  %1668 = vst.msk [vmem:[#allocation35 + $0x8] sm:$0xff] %vm477_vm0, %v1665_v61 }
 0x86a   :  { %v1812_v63 = vmul.f32 %v2367_v62, %v1810_v29  ;;  %vm1818_vm15 = vweird.f32 %v2367_v62 }
 0x86b   :  { %vm1819_vm3 = vmor %vm1817_vm1, %vm1818_vm15 }
 0x86c   :  { %v1813_v0 = vmul.f32 %v2367_v62, %v1812_v63 }
 0x86e   :  { %v1814_v1 = vmul.f32 0.5, %v1813_v0 }
 0x870   :  { %v1815_v2 = vsub.f32 1.5, %v1814_v1 }
 0x872   :  { %v1816_v3 = vmul.f32 %v2367_v62, %v1815_v2 }
 0x874   :  { %v1820_v4 = vsel %vm1819_vm3, %v2367_v62, %v1816_v3 }
 0x875   :  { %2240 = vmatmul.msk.f32.vlgmr.msra.gmra.mxu1 %vm638_vm2, %v1820_v4 }
 0x8cf   :  { %v1843_v11 = vpop.f32.mrf.mxu0 }
 0x8f2   :  { %v1866_v24 = vpop.f32.mrf.mxu1 }
 0x8f3   :  { %v1870_v47 = vmul.f32 %v1869_v8, %v1866_v24 }
 0x8f5   :  { %v1875_v12 = vrot.slane %v1870_v47, 1  ;;  %v1876_v14 = vperm.slane %v1870_v47, 0  ;;  %v1871_v15 = vmul.f32 %v1870_v47, %v1843_v11 }
 0x8f7   :  { %v1877_v19 = vperm.slane %v1875_v12, 0  ;;  %v1873_v21 = vsub.f32 %v1872_v10, %v1871_v15  ;;  %v1880_v52 = vmul.f32 %v1876_v14, %v3559_v9 }
 0x8f9   :  { %v1883_v55 = vrot.slane %v1873_v21, 1  ;;  %v1884_v23 = vperm.slane %v1873_v21, 0  ;;  %v1881_v27 = vmul.f32 %v1877_v19, %v3561_v22 }
 0x8fb   :  { %v1885_v28 = vperm.slane %v1883_v55, 0  ;;  %v1888_v18 = vadd.f32 %v1884_v23, %v1880_v52 }
 0x8fd   :  { %v1889_v20 = vadd.f32 %v1885_v28, %v1881_v27  ;;  %v1890_v32 = vmax.f32 %v1888_v18, 0.0 }
 0x8ff   :  { %v1891_v5 = vmax.f32 %v1889_v20, 0.0 }
 0x901   :  { %v1892_v33 = vpack.c.bf16 %v1891_v5, %v1890_v32 }
 0x903   :  { %2249 = vmatmul.msk.bf16.vlgmr.msra.gmra.mxu2 %vm477_vm0, %v1892_v33 }
 0x904   :  { %2823 = shalt.err (!%p2820_p10)
}
 0x905   :  { %1957 = dma.vmem_to_hbm [thread:$0]  %s1950_s2, 512, %s1952_s11, [#allocation33], %s3010_s15, %s3010_s15, %s3011_s6  }
 0x906   :  { %s3013_s30 = smov [#allocation35]   ;;  %s1977_s29 = sshll.u32 %s3242_s9, 4  ;;  %s1978_s29 = int_to_ptr.hbm [resolvable:$true] %s1977_s29 }
 0x907   :  { %s1975_s20 = sshll.u32 %s3013_s30, 4  ;;  %s2836_s3 = sshra.s32 %s1978_s29, 4  ;;  %s1976_s20 = int_to_ptr.vmem [resolvable:$true] %s1975_s20  ;;  %s2837_s3 = int_to_ptr.hbm [resolvable:$true] %s2836_s3 }
 0x908   :  { %s2838_s18 = scalar_lea.hbm %s2837_s3, 16  ;;  %s2840_s4 = scalar_lea.hbm %s3242_s9, 16 }
 0x909   :  { %p2839_p11 = scmp.ne.s32.totalorder %s2837_s3, %s2838_s18  ;;  %p2841_p12 = scmp.lt.s32.totalorder %s2837_s3, %s3242_s9 }
 0x90a   :  { %p2842_p13 = scmp.lt.s32.totalorder %s2840_s4, %s2838_s18 }
 0x90c   :  { %p2843_p0 = por %p2842_p13, %p2841_p12 }
 0x90e   :  { %p2844_p1 = pnand %p2843_p0, %p2839_p11 }
 0x910   :  { %2847 = shalt.err (!%p2844_p1)
}
 0x911   :  { %s3705_s23 = sld [smem:[#allocation77_spill]]  ;;  %s3014_s28 = smov [#allocation31]  }
 0x912   :  { %1983 = dma.vmem_to_hbm [thread:$0]  %s1976_s20, 256, %s1978_s29, [#allocation36], %s3010_s15, %s3010_s15, %s3011_s6  }
 0x913   :  { %s1936_s0 = sshll.u32 %s3014_s28, 4  ;;  %s1937_s0 = int_to_ptr.vmem [resolvable:$true] %s1936_s0 }
 0x917   :  { %s1938_s26 = sshll.u32 %s3705_s23, 4  ;;  %s2864_s9 = scalar_lea.hbm %s3705_s23, 128  ;;  %s1939_s26 = int_to_ptr.hbm [resolvable:$true] %s1938_s26 }
 0x918   :  { %s2860_s12 = sshra.s32 %s1939_s26, 4  ;;  %s2861_s12 = int_to_ptr.hbm [resolvable:$true] %s2860_s12 }
 0x919   :  { %s2862_s17 = scalar_lea.hbm %s2861_s12, 128  ;;  %p2865_p3 = scmp.lt.s32.totalorder %s2861_s12, %s3705_s23 }
 0x91a   :  { %p2863_p2 = scmp.ne.s32.totalorder %s2861_s12, %s2862_s17  ;;  %p2866_p4 = scmp.lt.s32.totalorder %s2864_s9, %s2862_s17 }
 0x91c   :  { %p2867_p5 = por %p2866_p4, %p2865_p3 }
 0x91e   :  { %p2868_p6 = pnand %p2867_p5, %p2863_p2 }
 0x920   :  { %2871 = shalt.err (!%p2868_p6)
}
 0x921   :  { %s3015_s27 = smov 256   ;;  %s3016_s1 = smov 16  }
 0x922   :  { %1944 = dma.vmem_to_hbm [thread:$0]  %s1937_s0, 2048, %s1939_s26, [#allocation4], %s3015_s27, %s3015_s27, %s3016_s1  }
 0x923   :  { %s3017_s7 = smov [#allocation34]   ;;  %s1964_s10 = sshll.u32 %s3237_s8, 4  ;;  %s1965_s10 = int_to_ptr.hbm [resolvable:$true] %s1964_s10 }
 0x924   :  { %s1962_s21 = sshll.u32 %s3017_s7, 4  ;;  %s2884_s19 = sshra.s32 %s1965_s10, 4  ;;  %s1963_s21 = int_to_ptr.vmem [resolvable:$true] %s1962_s21  ;;  %s2885_s19 = int_to_ptr.hbm [resolvable:$true] %s2884_s19 }
 0x925   :  { %s2886_s25 = scalar_lea.hbm %s2885_s19, 16  ;;  %s2888_s24 = scalar_lea.hbm %s3237_s8, 16 }
 0x926   :  { %p2887_p7 = scmp.ne.s32.totalorder %s2885_s19, %s2886_s25  ;;  %p2889_p8 = scmp.lt.s32.totalorder %s2885_s19, %s3237_s8 }
 0x927   :  { %p2890_p9 = scmp.lt.s32.totalorder %s2888_s24, %s2886_s25 }
 0x929   :  { %p2891_p10 = por %p2890_p9, %p2889_p8 }
 0x92b   :  { %p2892_p11 = pnand %p2891_p10, %p2887_p7 }
 0x92d   :  { %2895 = shalt.err (!%p2892_p11)
}
 0x92e   :  { %s3706_s5 = sld [smem:[#allocation76_spill]]  ;;  %s3018_s2 = smov [#allocation37]  }
 0x92f   :  { %1970 = dma.vmem_to_hbm [thread:$0]  %s1963_s21, 256, %s1965_s10, [#allocation33], %s3010_s15, %s3010_s15, %s3011_s6  }
 0x930   :  { %s1988_s11 = sshll.u32 %s3018_s2, 4  ;;  %s1990_s8 = sshll.u32 %s3247_s14, 4  ;;  %s1989_s11 = int_to_ptr.vmem [resolvable:$true] %s1988_s11  ;;  %s1991_s8 = int_to_ptr.hbm [resolvable:$true] %s1990_s8 }
 0x931   :  { %s2908_s13 = sshra.s32 %s1991_s8, 4  ;;  %s2912_s22 = scalar_lea.hbm %s3247_s14, 16  ;;  %s2909_s13 = int_to_ptr.hbm [resolvable:$true] %s2908_s13 }
 0x932   :  { %s2910_s16 = scalar_lea.hbm %s2909_s13, 16  ;;  %p2913_p13 = scmp.lt.s32.totalorder %s2909_s13, %s3247_s14 }
 0x933   :  { %p2911_p12 = scmp.ne.s32.totalorder %s2909_s13, %s2910_s16  ;;  %p2914_p0 = scmp.lt.s32.totalorder %s2912_s22, %s2910_s16 }
 0x934   :  { %v2357_v9 = vld [vmem:[%s3706_s5] ss:$0 sm:$0xff] }
 0x935   :  { %p2915_p1 = por %p2914_p0, %p2913_p13 }
 0x937   :  { %p2916_p2 = pnand %p2915_p1, %p2911_p12 }
 0x986   :  { %v1925_v22 = vpop.f32.mrf.mxu2 }
 0x987   :  { %v1926_v34 = vadd.f32 %v2357_v9, %v1925_v22 }
 0x989   :  { %1930 = vst.msk [vmem:[#allocation37] sm:$0xff] %vm638_vm2, %v1926_v34 }
 0x98e   :  { %v1927_v35 = vpop.f32.mrf.mxu2 }
 0x98f   :  { %v1928_v36 = vadd.f32 %v2357_v9, %v1927_v35 }
 0x991   :  { %1931 = vst.msk [vmem:[#allocation37 + $0x8] sm:$0xff] %vm638_vm2, %v1928_v36 }
 0x992   :  { %2919 = shalt.err (!%p2916_p2)
}
 0x993   :  { %1996 = dma.vmem_to_hbm [thread:$0]  %s1989_s11, 256, %s1991_s8, [#allocation36], %s3010_s15, %s3010_s15, %s3011_s6  }
 0x994   :  { %2940 = dma.done.wait [#allocation4], 2048  }
 0x995   :  { %2941 = vsyncadd [#allocation4], 4294965248 }
 0x996   :  { %2942 = dma.done.wait [#allocation33], 768  }
 0x997   :  { %2943 = vsyncadd [#allocation33], 4294966528 }
 0x998   :  { %2944 = dma.done.wait [#allocation36], 512  }
 0x999   :  { %2945 = vsyncadd [#allocation36], 4294966784 }
 0x99a   :  { %2017 = vsyncpa [#allocation3], 1 }
 0x99b   :  { %2018 = vsyncpa [#allocation6], 1 }
 0x99c   :  { %2019 = vsyncpa [#allocation9], 1 }
 0x99d   :  { %2020 = vsyncpa [#allocation12], 1 }
 0x99e   :  { %2021 = vsyncpa [#allocation15], 1 }
 0x99f   :  { %2022 = vsyncpa [#allocation18], 1 }
 0x9a0   :  { %2023 = vsyncpa [#allocation21], 1 }
 0x9a1   :  { %2024 = vsyncpa [#allocation24], 1 }
 0x9a2   :  { %2025 = vsyncpa [#allocation27], 1 }
 0x9a3   :  { %2026 = vsyncpa [#allocation30], 1 }
 0x9a4   :  { %2027 = vsyncpa [#allocation4], 1 }
 0x9a5   :  { %2028 = vsyncpa [#allocation33], 1 }
 0x9a6   :  { %2029 = vsyncpa [#allocation36], 1 }

</bundles_post_ra>
